<compile_context>
chip_gen: v7x
topology: tpu7x:2x2x1
jax: 0.10.0
libtpu: 0.0.40
codegen_flags: <defaults>
</compile_context>

<pallas_src>
import functools
import math

import jax
import jax.numpy as jnp
from jax.experimental import pallas as pl
from jax.experimental.pallas import tpu as pltpu


def _attention_kernel(qx_ref, kvx_ref, maskb_ref, pairb_ref,
                      wq_ref, wk_ref, wv_ref, wg_ref, wo_ref,
                      out_ref, *, no_heads, c_hidden):
    Bt, Q, Cq = qx_ref.shape
    _, K, Ck = kvx_ref.shape
    H, C = no_heads, c_hidden
    mm_dtype = qx_ref.dtype   # matmul operand dtype (bf16 callers -> bf16 MXU operands)

    # Flatten batch x seq so the projection matmuls see a tall M dimension and the
    # loads/stores are (sublane-)dense slabs.
    qx = qx_ref[...].reshape(Bt * Q, Cq)
    kvx = kvx_ref[...].reshape(Bt * K, Ck)

    # Linear projections (Linear(bias=False)); 1/sqrt(C) is pre-folded into Wq.
    q = jnp.dot(qx, wq_ref[...], preferred_element_type=jnp.float32)   # [Bt*Q, H*C]
    k = jnp.dot(kvx, wk_ref[...], preferred_element_type=jnp.float32)  # [Bt*K, H*C]
    v = jnp.dot(kvx, wv_ref[...], preferred_element_type=jnp.float32)  # [Bt*K, H*C]
    # Gating path: sigmoid(linear_g(q_x)) kept in f32 (VPU/EUP math).
    g = jax.nn.sigmoid(
        jnp.dot(qx, wg_ref[...], preferred_element_type=jnp.float32))  # [Bt*Q, H*C]

    # [Bt, L, H, C] -> [Bt*H, L, C]: collapse (batch, head) into one batch dim so the
    # attention einsums are single-batch-dim MXU matmuls.
    def to_heads(x, L):
        x = x.reshape(Bt, L, H, C).transpose(0, 2, 1, 3)    # [Bt, H, L, C]
        return x.reshape(Bt * H, L, C)

    qh = to_heads(q, Q).astype(mm_dtype)
    kh = to_heads(k, K).astype(mm_dtype)
    vh = to_heads(v, K)

    # Scores + biases -> softmax (f32 elementwise math).
    s = jnp.einsum('nqc,nkc->nqk', qh, kh,
                   preferred_element_type=jnp.float32)       # [Bt*H, Q, K]
    bias = (maskb_ref[...].astype(jnp.float32)               # [Bt, 1, 1, K]
            + pairb_ref[...].astype(jnp.float32))            # [1,  H, Q, K]
    s = s + bias.reshape(Bt * H, Q, K)
    p = jax.nn.softmax(s, axis=-1)                           # [Bt*H, Q, K] f32

    # Attention output, back to [Bt*Q, H*C].
    o = jnp.einsum('nqk,nkc->nqc', p.astype(mm_dtype), vh.astype(mm_dtype),
                   preferred_element_type=jnp.float32)       # [Bt*H, Q, C]
    o = o.reshape(Bt, H, Q, C).transpose(0, 2, 1, 3).reshape(Bt * Q, H * C)

    # Sigmoid gating (f32) + output projection -> dense [Bt*Q, Cq] slab store.
    o = o * g
    out = jnp.dot(o.astype(mm_dtype), wo_ref[...],
                  preferred_element_type=jnp.float32)        # [Bt*Q, Cq]
    out_ref[...] = out.reshape(Bt, Q, Cq).astype(out_ref.dtype)


def _choose_batch_tile(B, Q, K, H, C, Cq, Ck, itemsize, budget_bytes=24 << 20):
    """Largest divisor of B whose per-step VMEM footprint stays under budget."""
    HC = H * C
    best = 1
    for bt in range(1, B + 1):
        if B % bt != 0:
            continue
        # Double-buffered per-step DMA slabs (q_x, kv_x, out, mask bias).
        io = 2 * bt * (2 * Q * Cq + K * Ck + K) * itemsize
        # f32 in-kernel intermediates (q/k/v/g, scores, probs, gated o, out).
        inter = 4 * bt * (3 * Q * HC + 2 * K * HC + 2 * H * Q * K + Q * Cq)
        if io + inter <= budget_bytes:
            best = bt
    return best


def attention_pallas(q_x, kv_x, wq, wk, wv, wg, wo, mask_bias, pair_bias, *,
                     no_heads, c_hidden, batch_tile=None,
                     vmem_limit_bytes=64 * 1024 * 1024):
    """q_x: [B,Q,Cq], kv_x: [B,K,Ck], weights [in,out] (Wq pre-scaled by 1/sqrt(C)),
    mask_bias: [B,1,1,K], pair_bias: [1,H,Q,K]  ->  [B,Q,Cq]."""
    B, Q, Cq = q_x.shape
    _, K, Ck = kv_x.shape
    H, C = no_heads, c_hidden
    HC = H * C
    assert wq.shape == (Cq, HC) and wg.shape == (Cq, HC)
    assert wk.shape == (Ck, HC) and wv.shape == (Ck, HC)
    assert wo.shape == (HC, Cq)
    assert mask_bias.shape == (B, 1, 1, K)
    assert pair_bias.shape == (1, H, Q, K)

    if batch_tile is None:
        batch_tile = _choose_batch_tile(B, Q, K, H, C, Cq, Ck, q_x.dtype.itemsize)
    Bt = batch_tile
    assert B % Bt == 0, "batch_tile must divide batch"

    kernel = functools.partial(_attention_kernel, no_heads=H, c_hidden=C)

    return pl.pallas_call(
        kernel,
        out_shape=jax.ShapeDtypeStruct((B, Q, Cq), q_x.dtype),
        grid_spec=pltpu.PrefetchScalarGridSpec(
            num_scalar_prefetch=0,
            grid=(B // Bt,),
            in_specs=[
                pl.BlockSpec((Bt, Q, Cq), lambda b: (b, 0, 0)),        # q_x
                pl.BlockSpec((Bt, K, Ck), lambda b: (b, 0, 0)),        # kv_x
                pl.BlockSpec((Bt, 1, 1, K), lambda b: (b, 0, 0, 0)),   # mask bias (per step)
                pl.BlockSpec((1, H, Q, K), lambda b: (0, 0, 0, 0)),    # pair bias (resident)
                pl.BlockSpec((Cq, HC), lambda b: (0, 0)),              # Wq (pre-scaled)
                pl.BlockSpec((Ck, HC), lambda b: (0, 0)),              # Wk
                pl.BlockSpec((Ck, HC), lambda b: (0, 0)),              # Wv
                pl.BlockSpec((Cq, HC), lambda b: (0, 0)),              # Wg
                pl.BlockSpec((HC, Cq), lambda b: (0, 0)),              # Wo
            ],
            out_specs=pl.BlockSpec((Bt, Q, Cq), lambda b: (b, 0, 0)),
        ),
        compiler_params=pltpu.CompilerParams(
            dimension_semantics=("parallel",),       # batch steps are independent
            vmem_limit_bytes=vmem_limit_bytes,
        ),
    )(q_x, kv_x, mask_bias, pair_bias, wq, wk, wv, wg, wo)


def attention_reference(q_x, kv_x, wq, wk, wv, wg, wo, biases, H, C):
    """Pure-JAX reproduction of the PyTorch forward (unscaled Wq, /sqrt(C) on q)."""
    B, Q, Cq = q_x.shape
    K = kv_x.shape[1]
    q = (q_x @ wq).reshape(B, Q, H, C).transpose(0, 2, 1, 3) / math.sqrt(C)
    k = (kv_x @ wk).reshape(B, K, H, C).transpose(0, 2, 1, 3)
    v = (kv_x @ wv).reshape(B, K, H, C).transpose(0, 2, 1, 3)
    a = jnp.einsum('bhqc,bhkc->bhqk', q, k)
    for b in biases:
        a = a + b
    a = jax.nn.softmax(a, axis=-1)
    o = jnp.einsum('bhqk,bhkc->bhqc', a, v).transpose(0, 2, 1, 3)   # [B,Q,H,C]
    g = jax.nn.sigmoid(q_x @ wg).reshape(B, Q, H, C)
    o = (o * g).reshape(B, Q, H * C)
    return o @ wo


if __name__ == "__main__":
    # Small shapes consistent with the module: Attention(c_q=32, c_k=24, c_v=24,
    # c_hidden=16, no_heads=4, gating=True)
    B, Q, K = 2, 8, 8
    C_q, C_k = 32, 24
    C_hidden, H = 16, 4
    HC = C_hidden * H

    key = jax.random.PRNGKey(0)
    ks = jax.random.split(key, 9)

    q_x = jax.random.normal(ks[0], (B, Q, C_q), dtype=jnp.float32)
    kv_x = jax.random.normal(ks[1], (B, K, C_k), dtype=jnp.float32)

    # Deterministic parameter init (weights kept as [in, out]).
    scale = 0.05
    wq = scale * jax.random.normal(ks[2], (C_q, HC), dtype=jnp.float32)
    wk = scale * jax.random.normal(ks[3], (C_k, HC), dtype=jnp.float32)
    wv = scale * jax.random.normal(ks[4], (C_k, HC), dtype=jnp.float32)
    wg = scale * jax.random.normal(ks[5], (C_q, HC), dtype=jnp.float32)
    wo = scale * jax.random.normal(ks[6], (HC, C_q), dtype=jnp.float32)

    # Two biases exactly as the module receives them (NOT pre-broadcast):
    # a mask-like bias [B,1,1,K] and a pair bias [1,H,Q,K].
    mask_bias = jax.random.normal(ks[7], (B, 1, 1, K), dtype=jnp.float32)
    pair_bias = jax.random.normal(ks[8], (1, H, Q, K), dtype=jnp.float32)

    # One-time parameter prep: fold 1/sqrt(c_hidden) into the stored query weight.
    wq_scaled = wq * (1.0 / math.sqrt(C_hidden))

    out = attention_pallas(q_x, kv_x, wq_scaled, wk, wv, wg, wo,
                           mask_bias, pair_bias, no_heads=H, c_hidden=C_hidden)
    out = jax.block_until_ready(out)

    ref = attention_reference(q_x, kv_x, wq, wk, wv, wg, wo,
                              [mask_bias, pair_bias], H, C_hidden)
    assert out.shape == (B, Q, C_q)
    assert jnp.allclose(out, ref, atol=1e-4, rtol=1e-4), "mismatch vs reference"

    print("KERNEL_OK")
</pallas_src>

<mosaic_0001>
module attributes {stable_mosaic.version = 11 : i64} {
  func.func @_attention_kernel(%arg0: i32, %arg1: memref<2x8x32xf32, #tpu.memory_space<vmem>>, %arg2: memref<2x8x24xf32, #tpu.memory_space<vmem>>, %arg3: memref<2x1x1x8xf32, #tpu.memory_space<vmem>>, %arg4: memref<1x4x8x8xf32, #tpu.memory_space<vmem>>, %arg5: memref<32x64xf32, #tpu.memory_space<vmem>>, %arg6: memref<24x64xf32, #tpu.memory_space<vmem>>, %arg7: memref<24x64xf32, #tpu.memory_space<vmem>>, %arg8: memref<32x64xf32, #tpu.memory_space<vmem>>, %arg9: memref<64x32xf32, #tpu.memory_space<vmem>>, %arg10: memref<2x8x32xf32, #tpu.memory_space<vmem>>) attributes {dimension_semantics = [#tpu.dimension_semantics<parallel>], iteration_bounds = array<i64: 1>, scalar_prefetch = 0 : i64, scratch_operands = 0 : i64, tpu.core_type = #tpu.core_type<tc>, window_params = [{transform_indices = @transform_0, window_bounds = array<i64: 2, 8, 32>}, {transform_indices = @transform_1, window_bounds = array<i64: 2, 8, 24>}, {transform_indices = @transform_2, window_bounds = array<i64: 2, 1, 1, 8>}, {pipeline_mode = #tpu.pipeline_mode<synchronous>, transform_indices = @transform_3, window_bounds = array<i64: 1, 4, 8, 8>}, {pipeline_mode = #tpu.pipeline_mode<synchronous>, transform_indices = @transform_4, window_bounds = array<i64: 32, 64>}, {pipeline_mode = #tpu.pipeline_mode<synchronous>, transform_indices = @transform_5, window_bounds = array<i64: 24, 64>}, {pipeline_mode = #tpu.pipeline_mode<synchronous>, transform_indices = @transform_6, window_bounds = array<i64: 24, 64>}, {pipeline_mode = #tpu.pipeline_mode<synchronous>, transform_indices = @transform_7, window_bounds = array<i64: 32, 64>}, {pipeline_mode = #tpu.pipeline_mode<synchronous>, transform_indices = @transform_8, window_bounds = array<i64: 64, 32>}, {transform_indices = @transform_9, window_bounds = array<i64: 2, 8, 32>}]} {
    %c0 = arith.constant 0 : index
    %c0_0 = arith.constant 0 : index
    %c0_1 = arith.constant 0 : index
    %0 = vector.load %arg1[%c0, %c0_0, %c0_1] : memref<2x8x32xf32, #tpu.memory_space<vmem>>, vector<2x8x32xf32>
    %1 = vector.shape_cast %0 : vector<2x8x32xf32> to vector<16x32xf32>
    %c0_2 = arith.constant 0 : index
    %c0_3 = arith.constant 0 : index
    %c0_4 = arith.constant 0 : index
    %2 = vector.load %arg2[%c0_2, %c0_3, %c0_4] : memref<2x8x24xf32, #tpu.memory_space<vmem>>, vector<2x8x24xf32>
    %3 = vector.shape_cast %2 : vector<2x8x24xf32> to vector<16x24xf32>
    %c0_5 = arith.constant 0 : index
    %c0_6 = arith.constant 0 : index
    %4 = vector.load %arg5[%c0_5, %c0_6] : memref<32x64xf32, #tpu.memory_space<vmem>>, vector<32x64xf32>
    %cst = arith.constant dense<0.000000e+00> : vector<16x64xf32>
    %5 = tpu.matmul %1, %4, %cst {dimension_numbers = #tpu.dot_dimension_numbers<[1], [0], [0], [1], [0, 0, 1, 1], [], []>} : vector<16x32xf32>, vector<32x64xf32>, vector<16x64xf32> -> vector<16x64xf32>
    %c0_7 = arith.constant 0 : index
    %c0_8 = arith.constant 0 : index
    %6 = vector.load %arg6[%c0_7, %c0_8] : memref<24x64xf32, #tpu.memory_space<vmem>>, vector<24x64xf32>
    %cst_9 = arith.constant dense<0.000000e+00> : vector<16x64xf32>
    %7 = tpu.matmul %3, %6, %cst_9 {dimension_numbers = #tpu.dot_dimension_numbers<[1], [0], [0], [1], [0, 0, 1, 1], [], []>} : vector<16x24xf32>, vector<24x64xf32>, vector<16x64xf32> -> vector<16x64xf32>
    %c0_10 = arith.constant 0 : index
    %c0_11 = arith.constant 0 : index
    %8 = vector.load %arg7[%c0_10, %c0_11] : memref<24x64xf32, #tpu.memory_space<vmem>>, vector<24x64xf32>
    %cst_12 = arith.constant dense<0.000000e+00> : vector<16x64xf32>
    %9 = tpu.matmul %3, %8, %cst_12 {dimension_numbers = #tpu.dot_dimension_numbers<[1], [0], [0], [1], [0, 0, 1, 1], [], []>} : vector<16x24xf32>, vector<24x64xf32>, vector<16x64xf32> -> vector<16x64xf32>
    %c0_13 = arith.constant 0 : index
    %c0_14 = arith.constant 0 : index
    %10 = vector.load %arg8[%c0_13, %c0_14] : memref<32x64xf32, #tpu.memory_space<vmem>>, vector<32x64xf32>
    %cst_15 = arith.constant dense<0.000000e+00> : vector<16x64xf32>
    %11 = tpu.matmul %1, %10, %cst_15 {dimension_numbers = #tpu.dot_dimension_numbers<[1], [0], [0], [1], [0, 0, 1, 1], [], []>} : vector<16x32xf32>, vector<32x64xf32>, vector<16x64xf32> -> vector<16x64xf32>
    %12 = arith.negf %11 : vector<16x64xf32>
    %13 = math.exp %12 : vector<16x64xf32>
    %cst_16 = arith.constant 1.000000e+00 : f32
    %14 = vector.broadcast %cst_16 : f32 to vector<16x64xf32>
    %15 = arith.addf %14, %13 : vector<16x64xf32>
    %16 = arith.divf %14, %15 : vector<16x64xf32>
    %17 = vector.shape_cast %5 : vector<16x64xf32> to vector<2x8x4x16xf32>
    %18 = tpu.transpose %17, [0, 2, 1, 3] : vector<2x8x4x16xf32> -> vector<2x4x8x16xf32>
    %19 = vector.shape_cast %18 : vector<2x4x8x16xf32> to vector<8x8x16xf32>
    %20 = vector.shape_cast %7 : vector<16x64xf32> to vector<2x8x4x16xf32>
    %21 = tpu.transpose %20, [0, 2, 1, 3] : vector<2x8x4x16xf32> -> vector<2x4x8x16xf32>
    %22 = vector.shape_cast %21 : vector<2x4x8x16xf32> to vector<8x8x16xf32>
    %23 = vector.shape_cast %9 : vector<16x64xf32> to vector<2x8x4x16xf32>
    %24 = tpu.transpose %23, [0, 2, 1, 3] : vector<2x8x4x16xf32> -> vector<2x4x8x16xf32>
    %25 = vector.shape_cast %24 : vector<2x4x8x16xf32> to vector<8x8x16xf32>
    "tpu.trace_start"() <{level = 10 : i32, message = "nqc,nkc->nqk"}> : () -> ()
    %cst_17 = arith.constant dense<0.000000e+00> : vector<8x8x8xf32>
    %26 = tpu.matmul %19, %22, %cst_17 {dimension_numbers = #tpu.dot_dimension_numbers<[2], [2], [1], [1], [0, 0, 0, 1, 1, 1], [0], [0]>} : vector<8x8x16xf32>, vector<8x8x16xf32>, vector<8x8x8xf32> -> vector<8x8x8xf32>
    "tpu.trace_stop"() : () -> ()
    %c0_18 = arith.constant 0 : index
    %c0_19 = arith.constant 0 : index
    %c0_20 = arith.constant 0 : index
    %c0_21 = arith.constant 0 : index
    %27 = vector.load %arg3[%c0_18, %c0_19, %c0_20, %c0_21] : memref<2x1x1x8xf32, #tpu.memory_space<vmem>>, vector<2x1x1x8xf32>
    %c0_22 = arith.constant 0 : index
    %c0_23 = arith.constant 0 : index
    %c0_24 = arith.constant 0 : index
    %c0_25 = arith.constant 0 : index
    %28 = vector.load %arg4[%c0_22, %c0_23, %c0_24, %c0_25] : memref<1x4x8x8xf32, #tpu.memory_space<vmem>>, vector<1x4x8x8xf32>
    %29 = vector.broadcast %27 : vector<2x1x1x8xf32> to vector<2x4x8x8xf32>
    %30 = vector.broadcast %28 : vector<1x4x8x8xf32> to vector<2x4x8x8xf32>
    %31 = arith.addf %29, %30 : vector<2x4x8x8xf32>
    %32 = vector.shape_cast %31 : vector<2x4x8x8xf32> to vector<8x8x8xf32>
    %33 = arith.addf %26, %32 : vector<8x8x8xf32>
    %cst_26 = arith.constant dense<0xFF800000> : vector<8x8xf32>
    %34 = vector.multi_reduction <maximumf>, %33, %cst_26 [2] : vector<8x8x8xf32> to vector<8x8xf32>
    %cst_27 = arith.constant 0xFF800000 : f32
    %35 = vector.broadcast %cst_27 : f32 to vector<8x8xf32>
    %36 = arith.maximumf %35, %34 : vector<8x8xf32>
    %37 = vector.shape_cast %36 : vector<8x8xf32> to vector<8x8x1xf32>
    %38 = vector.broadcast %37 : vector<8x8x1xf32> to vector<8x8x8xf32>
    %39 = arith.subf %33, %38 : vector<8x8x8xf32>
    %40 = math.exp %39 : vector<8x8x8xf32>
    %cst_28 = arith.constant dense<0.000000e+00> : vector<8x8xf32>
    %41 = vector.multi_reduction <add>, %40, %cst_28 [2] : vector<8x8x8xf32> to vector<8x8xf32>
    %42 = vector.shape_cast %41 : vector<8x8xf32> to vector<8x8x1xf32>
    %43 = vector.broadcast %42 : vector<8x8x1xf32> to vector<8x8x8xf32>
    %44 = arith.divf %40, %43 : vector<8x8x8xf32>
    "tpu.trace_start"() <{level = 10 : i32, message = "nqk,nkc->nqc"}> : () -> ()
    %cst_29 = arith.constant dense<0.000000e+00> : vector<8x8x16xf32>
    %45 = tpu.matmul %44, %25, %cst_29 {dimension_numbers = #tpu.dot_dimension_numbers<[2], [1], [1], [2], [0, 0, 0, 1, 1, 2], [0], [0]>} : vector<8x8x8xf32>, vector<8x8x16xf32>, vector<8x8x16xf32> -> vector<8x8x16xf32>
    "tpu.trace_stop"() : () -> ()
    %46 = vector.shape_cast %45 : vector<8x8x16xf32> to vector<2x4x8x16xf32>
    %47 = tpu.transpose %46, [0, 2, 1, 3] : vector<2x4x8x16xf32> -> vector<2x8x4x16xf32>
    %48 = vector.shape_cast %47 : vector<2x8x4x16xf32> to vector<16x64xf32>
    %49 = arith.mulf %48, %16 : vector<16x64xf32>
    %c0_30 = arith.constant 0 : index
    %c0_31 = arith.constant 0 : index
    %50 = vector.load %arg9[%c0_30, %c0_31] : memref<64x32xf32, #tpu.memory_space<vmem>>, vector<64x32xf32>
    %cst_32 = arith.constant dense<0.000000e+00> : vector<16x32xf32>
    %51 = tpu.matmul %49, %50, %cst_32 {dimension_numbers = #tpu.dot_dimension_numbers<[1], [0], [0], [1], [0, 0, 1, 1], [], []>} : vector<16x64xf32>, vector<64x32xf32>, vector<16x32xf32> -> vector<16x32xf32>
    %52 = vector.shape_cast %51 : vector<16x32xf32> to vector<2x8x32xf32>
    %c0_33 = arith.constant 0 : index
    %c0_34 = arith.constant 0 : index
    %c0_35 = arith.constant 0 : index
    %53 = vector.load %arg10[%c0_33, %c0_34, %c0_35] : memref<2x8x32xf32, #tpu.memory_space<vmem>>, vector<2x8x32xf32>
    tpu.vector_store %arg10[%c0_33, %c0_34, %c0_35], %52 {strides = array<i32>} : memref<2x8x32xf32, #tpu.memory_space<vmem>>, vector<2x8x32xf32>,
    return
  }
  func.func @transform_0(%arg0: i32) -> (i32, i32, i32) {
    %c0_i32 = arith.constant 0 : i32
    %c0_i32_0 = arith.constant 0 : i32
    %c0_i32_1 = arith.constant 0 : i32
    return %arg0, %c0_i32, %c0_i32_0 : i32, i32, i32
  }
  func.func @transform_1(%arg0: i32) -> (i32, i32, i32) {
    %c0_i32 = arith.constant 0 : i32
    %c0_i32_0 = arith.constant 0 : i32
    %c0_i32_1 = arith.constant 0 : i32
    return %arg0, %c0_i32, %c0_i32_0 : i32, i32, i32
  }
  func.func @transform_2(%arg0: i32) -> (i32, i32, i32, i32) {
    %c0_i32 = arith.constant 0 : i32
    %c0_i32_0 = arith.constant 0 : i32
    %c0_i32_1 = arith.constant 0 : i32
    %c0_i32_2 = arith.constant 0 : i32
    return %arg0, %c0_i32, %c0_i32_0, %c0_i32_1 : i32, i32, i32, i32
  }
  func.func @transform_3(%arg0: i32) -> (i32, i32, i32, i32) {
    %c0_i32 = arith.constant 0 : i32
    %c0_i32_0 = arith.constant 0 : i32
    %c0_i32_1 = arith.constant 0 : i32
    %c0_i32_2 = arith.constant 0 : i32
    %c0_i32_3 = arith.constant 0 : i32
    return %c0_i32, %c0_i32_0, %c0_i32_1, %c0_i32_2 : i32, i32, i32, i32
  }
  func.func @transform_4(%arg0: i32) -> (i32, i32) {
    %c0_i32 = arith.constant 0 : i32
    %c0_i32_0 = arith.constant 0 : i32
    %c0_i32_1 = arith.constant 0 : i32
    return %c0_i32, %c0_i32_0 : i32, i32
  }
  func.func @transform_5(%arg0: i32) -> (i32, i32) {
    %c0_i32 = arith.constant 0 : i32
    %c0_i32_0 = arith.constant 0 : i32
    %c0_i32_1 = arith.constant 0 : i32
    return %c0_i32, %c0_i32_0 : i32, i32
  }
  func.func @transform_6(%arg0: i32) -> (i32, i32) {
    %c0_i32 = arith.constant 0 : i32
    %c0_i32_0 = arith.constant 0 : i32
    %c0_i32_1 = arith.constant 0 : i32
    return %c0_i32, %c0_i32_0 : i32, i32
  }
  func.func @transform_7(%arg0: i32) -> (i32, i32) {
    %c0_i32 = arith.constant 0 : i32
    %c0_i32_0 = arith.constant 0 : i32
    %c0_i32_1 = arith.constant 0 : i32
    return %c0_i32, %c0_i32_0 : i32, i32
  }
  func.func @transform_8(%arg0: i32) -> (i32, i32) {
    %c0_i32 = arith.constant 0 : i32
    %c0_i32_0 = arith.constant 0 : i32
    %c0_i32_1 = arith.constant 0 : i32
    return %c0_i32, %c0_i32_0 : i32, i32
  }
  func.func @transform_9(%arg0: i32) -> (i32, i32, i32) {
    %c0_i32 = arith.constant 0 : i32
    %c0_i32_0 = arith.constant 0 : i32
    %c0_i32_1 = arith.constant 0 : i32
    return %arg0, %c0_i32, %c0_i32_0 : i32, i32, i32
  }
}

</mosaic_0001>

<bundles_post_ra>
// kernel: tpu_custom_call.1
= control target key start
LH: loop header
LB: loop body
LE: loop exit
PB: predicated region body
PF: predicated region fallthrough
CT: control target
= control target key end

     0   :  { %14 = vsyncpa [#allocation3], 0  ;;  %s4334_s0 = inlined_call_operand.hbm [shape: f32[2,8,32], index: 0, kind: input, shape index: {}]   ;;  %s4335_s1 = inlined_call_operand.hbm [shape: f32[2,8,24], index: 1, kind: input, shape index: {}]   ;;  %s4336_s2 = inlined_call_operand.hbm [shape: f32[2,1,1,8], index: 2, kind: input, shape index: {}]   ;;  %s4337_s3 = inlined_call_operand.hbm [shape: f32[1,4,8,8], index: 3, kind: input, shape index: {}]   ;;  %s4338_s4 = inlined_call_operand.hbm [shape: f32[32,64], index: 4, kind: input, shape index: {}]   ;;  %s4339_s5 = inlined_call_operand.hbm [shape: f32[24,64], index: 5, kind: input, shape index: {}]   ;;  %s4340_s6 = inlined_call_operand.hbm [shape: f32[24,64], index: 6, kind: input, shape index: {}]   ;;  %s4341_s7 = inlined_call_operand.hbm [shape: f32[32,64], index: 7, kind: input, shape index: {}]   ;;  %s4342_s8 = inlined_call_operand.hbm [shape: f32[64,32], index: 8, kind: input, shape index: {}]   ;;  %s4343_s9 = inlined_call_operand.hbm [shape: f32[2,8,32], index: 9, kind: output, shape index: {}]  }
   0x1   :  { %15 = vsyncpa [#allocation6], 0 }
   0x2   :  { %16 = vsyncpa [#allocation9], 0 }
   0x3   :  { %17 = vsyncpa [#allocation12], 0 }
   0x4   :  { %18 = vsyncpa [#allocation15], 0 }
   0x5   :  { %19 = vsyncpa [#allocation4], 0  ;;  %s3693_s30 = smov [#allocation5]   ;;  %s3694_s11 = smov [#allocation8]  }
   0x6   :  { %s37_s10 = sshll.u32 %s3693_s30, 4  ;;  %s61_s12 = sshll.u32 %s3694_s11, 4  ;;  %s38_s10 = int_to_ptr.vmem [resolvable:$true] %s37_s10  ;;  %s3766_s12 = int_to_ptr.vmem [resolvable:$true] %s61_s12 }
   0x7   :  { %s3461_s15 = scalar_lea.hbm %s4335_s1, 256 }
   0x8   :  { %p3462_p0 = scmp.ne.s32.totalorder %s4335_s1, %s3461_s15  ;;  %p3465_p1 = scmp.lt.u32.totalorder %s3461_s15, %s4335_s1 }
   0xa   :  { %p3467_p2 = pnand %p3465_p1, %p3462_p0 }
   0xc   :  { %3470 = shalt.err (!%p3467_p2)
}
   0xd   :  { %s3471_s20 = scalar_lea.vmem %s38_s10, 256  ;;  %p3476_p4 = scmp.lt.s32.totalorder %s38_s10, %s38_s10 }
   0xe   :  { %p3472_p3 = scmp.ne.s32.totalorder %s38_s10, %s3471_s20  ;;  %p3477_p5 = scmp.lt.s32.totalorder %s3471_s20, %s3471_s20 }
  0x10   :  { %p3478_p6 = por %p3477_p5, %p3476_p4 }
  0x12   :  { %p3479_p7 = pnand %p3478_p6, %p3472_p3 }
  0x14   :  { %3482 = shalt.err (!%p3479_p7)
}
  0x15   :  { %s3695_s21 = smov 128   ;;  %s3696_s22 = smov 8  }
  0x16   :  { %43 = dma.hbm_to_vmem [thread:$0]  %s4335_s1, 256, %s38_s10, [#allocation6], %s3695_s21, %s3695_s21, %s3696_s22  }
  0x17   :  { %s3483_s27 = scalar_lea.hbm %s4337_s3, 512 }
  0x18   :  { %p3484_p8 = scmp.ne.s32.totalorder %s4337_s3, %s3483_s27  ;;  %p3487_p9 = scmp.lt.u32.totalorder %s3483_s27, %s4337_s3 }
  0x1a   :  { %p3489_p10 = pnand %p3487_p9, %p3484_p8 }
  0x1c   :  { %3492 = shalt.err (!%p3489_p10)
}
  0x1d   :  { %s3493_s13 = scalar_lea.vmem %s3766_s12, 512  ;;  %p3498_p12 = scmp.lt.s32.totalorder %s3766_s12, %s3766_s12 }
  0x1e   :  { %p3494_p11 = scmp.ne.s32.totalorder %s3766_s12, %s3493_s13  ;;  %p3499_p13 = scmp.lt.s32.totalorder %s3493_s13, %s3493_s13 }
  0x20   :  { %p3500_p0 = por %p3499_p13, %p3498_p12 }
  0x22   :  { %p3501_p1 = pnand %p3500_p0, %p3494_p11 }
  0x24   :  { %3504 = shalt.err (!%p3501_p1)
}
  0x25   :  { %67 = dma.hbm_to_vmem [thread:$0]  %s4337_s3, 512, %s3766_s12, [#allocation9], %s3695_s21, %s3695_s21, %s3696_s22  }
  0x26   :  { %s3697_s14 = smov [#allocation11]   ;;  %s3698_s16 = smov [#allocation14]  }
  0x27   :  { %s85_s15 = sshll.u32 %s3697_s14, 4  ;;  %s109_s17 = sshll.u32 %s3698_s16, 4  ;;  %s86_s15 = int_to_ptr.vmem [resolvable:$true] %s85_s15  ;;  %s3803_s17 = int_to_ptr.vmem [resolvable:$true] %s109_s17 }
  0x28   :  { %s3505_s20 = scalar_lea.hbm %s4339_s5, 384 }
  0x29   :  { %p3506_p2 = scmp.ne.s32.totalorder %s4339_s5, %s3505_s20  ;;  %p3509_p3 = scmp.lt.u32.totalorder %s3505_s20, %s4339_s5 }
  0x2b   :  { %p3511_p4 = pnand %p3509_p3, %p3506_p2 }
  0x2d   :  { %3514 = shalt.err (!%p3511_p4)
}
  0x2e   :  { %s3515_s3 = scalar_lea.vmem %s86_s15, 384  ;;  %p3520_p6 = scmp.lt.s32.totalorder %s86_s15, %s86_s15 }
  0x2f   :  { %p3516_p5 = scmp.ne.s32.totalorder %s86_s15, %s3515_s3  ;;  %p3521_p7 = scmp.lt.s32.totalorder %s3515_s3, %s3515_s3 }
  0x31   :  { %p3522_p8 = por %p3521_p7, %p3520_p6 }
  0x33   :  { %p3523_p9 = pnand %p3522_p8, %p3516_p5 }
  0x35   :  { %3526 = shalt.err (!%p3523_p9)
}
  0x36   :  { %91 = dma.hbm_to_vmem [thread:$0]  %s4339_s5, 384, %s86_s15, [#allocation12], %s3695_s21, %s3695_s21, %s3696_s22  }
  0x37   :  { %s3527_s30 = scalar_lea.hbm %s4341_s7, 512 }
  0x38   :  { %p3528_p10 = scmp.ne.s32.totalorder %s4341_s7, %s3527_s30  ;;  %p3531_p11 = scmp.lt.u32.totalorder %s3527_s30, %s4341_s7 }
  0x3a   :  { %p3533_p12 = pnand %p3531_p11, %p3528_p10 }
  0x3c   :  { %3536 = shalt.err (!%p3533_p12)
}
  0x3d   :  { %s3537_s14 = scalar_lea.vmem %s3803_s17, 512  ;;  %p3542_p0 = scmp.lt.s32.totalorder %s3803_s17, %s3803_s17 }
  0x3e   :  { %p3538_p13 = scmp.ne.s32.totalorder %s3803_s17, %s3537_s14  ;;  %p3543_p1 = scmp.lt.s32.totalorder %s3537_s14, %s3537_s14 }
  0x40   :  { %p3544_p2 = por %p3543_p1, %p3542_p0 }
  0x42   :  { %p3545_p3 = pnand %p3544_p2, %p3538_p13 }
  0x44   :  { %3548 = shalt.err (!%p3545_p3)
}
  0x45   :  { %115 = dma.hbm_to_vmem [thread:$0]  %s4341_s7, 512, %s3803_s17, [#allocation15], %s3695_s21, %s3695_s21, %s3696_s22  }
  0x46   :  { %s3699_s16 = smov [#allocation2]   ;;  %s3700_s19 = smov [#allocation7]  }
  0x47   :  { %s25_s18 = sshll.u32 %s3699_s16, 4  ;;  %s49_s20 = sshll.u32 %s3700_s19, 4  ;;  %s26_s18 = int_to_ptr.vmem [resolvable:$true] %s25_s18  ;;  %s3840_s20 = int_to_ptr.vmem [resolvable:$true] %s49_s20 }
  0x48   :  { %s3549_s25 = scalar_lea.hbm %s4334_s0, 256 }
  0x49   :  { %p3550_p4 = scmp.ne.s32.totalorder %s4334_s0, %s3549_s25  ;;  %p3553_p5 = scmp.lt.u32.totalorder %s3549_s25, %s4334_s0 }
  0x4b   :  { %p3555_p6 = pnand %p3553_p5, %p3550_p4 }
  0x4d   :  { %3558 = shalt.err (!%p3555_p6)
}
  0x4e   :  { %s3559_s7 = scalar_lea.vmem %s26_s18, 256  ;;  %p3564_p8 = scmp.lt.s32.totalorder %s26_s18, %s26_s18 }
  0x4f   :  { %p3560_p7 = scmp.ne.s32.totalorder %s26_s18, %s3559_s7  ;;  %p3565_p9 = scmp.lt.s32.totalorder %s3559_s7, %s3559_s7 }
  0x51   :  { %p3566_p10 = por %p3565_p9, %p3564_p8 }
  0x53   :  { %p3567_p11 = pnand %p3566_p10, %p3560_p7 }
  0x55   :  { %3570 = shalt.err (!%p3567_p11)
}
  0x56   :  { %31 = dma.hbm_to_vmem [thread:$0]  %s4334_s0, 256, %s26_s18, [#allocation3], %s3695_s21, %s3695_s21, %s3696_s22  }
  0x57   :  { %s3571_s11 = scalar_lea.hbm %s4336_s2, 32 }
  0x58   :  { %p3572_p12 = scmp.ne.s32.totalorder %s4336_s2, %s3571_s11  ;;  %p3575_p13 = scmp.lt.u32.totalorder %s3571_s11, %s4336_s2 }
  0x5a   :  { %p3577_p0 = pnand %p3575_p13, %p3572_p12 }
  0x5c   :  { %3580 = shalt.err (!%p3577_p0)
}
  0x5d   :  { %s3581_s5 = scalar_lea.vmem %s3840_s20, 32  ;;  %p3586_p2 = scmp.lt.s32.totalorder %s3840_s20, %s3840_s20 }
  0x5e   :  { %p3582_p1 = scmp.ne.s32.totalorder %s3840_s20, %s3581_s5  ;;  %p3587_p3 = scmp.lt.s32.totalorder %s3581_s5, %s3581_s5 }
  0x60   :  { %p3588_p4 = por %p3587_p3, %p3586_p2 }
  0x62   :  { %p3589_p5 = pnand %p3588_p4, %p3582_p1 }
  0x64   :  { %3592 = shalt.err (!%p3589_p5)
}
  0x65   :  { %s3701_s0 = smov 16   ;;  %s3702_s15 = smov 1  }
  0x66   :  { %55 = dma.hbm_to_vmem [thread:$0]  %s4336_s2, 32, %s3840_s20, [#allocation6], %s3701_s0, %s3701_s0, %s3702_s15  }
  0x67   :  { %s3703_s19 = smov [#allocation10]   ;;  %s3704_s24 = smov [#allocation13]  }
  0x68   :  { %s73_s23 = sshll.u32 %s3703_s19, 4  ;;  %s97_s25 = sshll.u32 %s3704_s24, 4  ;;  %s74_s23 = int_to_ptr.vmem [resolvable:$true] %s73_s23  ;;  %s3876_s25 = int_to_ptr.vmem [resolvable:$true] %s97_s25 }
  0x69   :  { %s3593_s12 = scalar_lea.hbm %s4338_s4, 512 }
  0x6a   :  { %p3594_p6 = scmp.ne.s32.totalorder %s4338_s4, %s3593_s12  ;;  %p3597_p7 = scmp.lt.u32.totalorder %s3593_s12, %s4338_s4 }
  0x6c   :  { %p3599_p8 = pnand %p3597_p7, %p3594_p6 }
  0x6e   :  { %3602 = shalt.err (!%p3599_p8)
}
  0x6f   :  { %s3603_s2 = scalar_lea.vmem %s74_s23, 512  ;;  %p3608_p10 = scmp.lt.s32.totalorder %s74_s23, %s74_s23 }
  0x70   :  { %p3604_p9 = scmp.ne.s32.totalorder %s74_s23, %s3603_s2  ;;  %p3609_p11 = scmp.lt.s32.totalorder %s3603_s2, %s3603_s2 }
  0x72   :  { %p3610_p12 = por %p3609_p11, %p3608_p10 }
  0x74   :  { %p3611_p13 = pnand %p3610_p12, %p3604_p9 }
  0x76   :  { %3614 = shalt.err (!%p3611_p13)
}
  0x77   :  { %79 = dma.hbm_to_vmem [thread:$0]  %s4338_s4, 512, %s74_s23, [#allocation9], %s3695_s21, %s3695_s21, %s3696_s22  }
  0x78   :  { %s3615_s13 = scalar_lea.hbm %s4340_s6, 384 }
  0x79   :  { %p3616_p0 = scmp.ne.s32.totalorder %s4340_s6, %s3615_s13  ;;  %p3619_p1 = scmp.lt.u32.totalorder %s3615_s13, %s4340_s6 }
  0x7b   :  { %p3621_p2 = pnand %p3619_p1, %p3616_p0 }
  0x7d   :  { %3624 = shalt.err (!%p3621_p2)
}
  0x7e   :  { %s3625_s15 = scalar_lea.vmem %s3876_s25, 384  ;;  %p3630_p4 = scmp.lt.s32.totalorder %s3876_s25, %s3876_s25 }
  0x7f   :  { %p3626_p3 = scmp.ne.s32.totalorder %s3876_s25, %s3625_s15  ;;  %p3631_p5 = scmp.lt.s32.totalorder %s3625_s15, %s3625_s15 }
  0x81   :  { %p3632_p6 = por %p3631_p5, %p3630_p4 }
  0x83   :  { %p3633_p7 = pnand %p3632_p6, %p3626_p3 }
  0x85   :  { %3636 = shalt.err (!%p3633_p7)
}
  0x86   :  { %103 = dma.hbm_to_vmem [thread:$0]  %s4340_s6, 384, %s3876_s25, [#allocation12], %s3695_s21, %s3695_s21, %s3696_s22  }
  0x87   :  { %s3705_s18 = smov [#allocation16]   ;;  %s3637_s26 = scalar_lea.hbm %s4342_s8, 1024 }
  0x88   :  { %s121_s19 = sshll.u32 %s3705_s18, 4  ;;  %p3638_p8 = scmp.ne.s32.totalorder %s4342_s8, %s3637_s26  ;;  %s122_s19 = int_to_ptr.vmem [resolvable:$true] %s121_s19 }
  0x89   :  { %p3641_p9 = scmp.lt.u32.totalorder %s3637_s26, %s4342_s8 }
  0x8b   :  { %p3643_p10 = pnand %p3641_p9, %p3638_p8 }
  0x8d   :  { %3646 = shalt.err (!%p3643_p10)
}
  0x8e   :  { %s3647_s17 = scalar_lea.vmem %s122_s19, 1024  ;;  %p3652_p12 = scmp.lt.s32.totalorder %s122_s19, %s122_s19 }
  0x8f   :  { %p3648_p11 = scmp.ne.s32.totalorder %s122_s19, %s3647_s17  ;;  %p3653_p13 = scmp.lt.s32.totalorder %s3647_s17, %s3647_s17 }
  0x91   :  { %p3654_p0 = por %p3653_p13, %p3652_p12 }
  0x93   :  { %p3655_p1 = pnand %p3654_p0, %p3648_p11 }
  0x95   :  { %3658 = shalt.err (!%p3655_p1)
}
  0x96   :  { %127 = dma.hbm_to_vmem [thread:$0]  %s4342_s8, 1024, %s122_s19, [#allocation15], %s3695_s21, %s3695_s21, %s3696_s22  }
  0x97   :  { %3681 = dma.done.wait [#allocation3], 256  }
  0x98   :  { %3682 = vsyncadd [#allocation3], 4294967040 }
  0x99   :  { %3683 = dma.done.wait [#allocation6], 288  }
  0x9a   :  { %3684 = vsyncadd [#allocation6], 4294967008 }
  0x9b   :  { %3685 = dma.done.wait [#allocation9], 1024  }
  0x9c   :  { %3686 = vsyncadd [#allocation9], 4294966272 }
  0x9d   :  { %3687 = dma.done.wait [#allocation12], 768  }
  0x9e   :  { %3688 = vsyncadd [#allocation12], 4294966528 }
  0x9f   :  { %3689 = dma.done.wait [#allocation15], 1536  }
  0xa0   :  { %3690 = vsyncadd [#allocation15], 4294965760  ;;  %vm163_vm0 = vcmask 261120   ;;  %v159_v0 = vld [vmem:[#allocation10] sm:$0xff]  ;;  %v160_v1 = vld [vmem:[#allocation10 + $0x8] sm:$0xff]  ;;  %vm248_vm1 = vcmask 195584   ;;  %v524_v31 = vlaneseq }
  0xa1   :  { %v161_v2 = vld [vmem:[#allocation10 + $0x10] sm:$0xff]  ;;  %v3358_v3 = vpack.c.bf16 %v160_v1, %v159_v0  ;;  %v162_v4 = vld [vmem:[#allocation10 + $0x18] sm:$0xff]  ;;  %v245_v7 = vld [vmem:[#allocation11] sm:$0xff]  ;;  %s3706_s8 = smov 96   ;;  %s3707_s28 = smov 112   ;;  %v3709_v28 = vmov 0.0  }
  0xa2   :  { %v155_v5 = vld [vmem:[#allocation2] sm:$0xff]  ;;  %v3362_v6 = vpack.c.bf16 %v162_v4, %v161_v2  ;;  %v246_v8 = vld [vmem:[#allocation11 + $0x8] sm:$0xff]  ;;  %v247_v12 = vld [vmem:[#allocation11 + $0x10] sm:$0xff]  ;;  %s3708_s2 = smov 80   ;;  %vm3710_vm2 = vmmov 0   ;;  %v525_v35 = vshrl.u32 %v524_v31, 7 }
  0xa3   :  { %3227 = vmatprep.mubr.msk.f32.mxu0 %vm163_vm0, %v155_v5  ;;  %3359 = vmatprep.subr.bf16.mxu0 %v3358_v3  ;;  %v157_v9 = vld [vmem:[#allocation5] sm:$0xff]  ;;  %v3366_v10 = vpack.c.bf16 %v246_v8, %v245_v7  ;;  %v156_v11 = vld [vmem:[#allocation2 + $0x8] sm:$0xff]  ;;  %v158_v13 = vld [vmem:[#allocation5 + $0x8] sm:$0xff]  ;;  %v3711_v29 = vmov 1983009808   ;;  %vm1401_vm3 = vcmask 130048  }
  0xa4   :  { %3361 = vmatpush3.bf16.msra.mxu0 %v3358_v3  ;;  %3245 = vmatprep.mubr.msk.f32.mxu1 %vm248_vm1, %v157_v9  ;;  %v330_v14 = vld [vmem:[#allocation13] sm:$0xff]  ;;  %v331_v15 = vld [vmem:[#allocation13 + $0x8] sm:$0xff]  ;;  %v332_v17 = vld [vmem:[#allocation13 + $0x10] sm:$0xff]  ;;  %v522_v30 = vunpack.c.l.s4 %v3711_v29  ;;  %v3712_v32 = vmov 1934713408   ;;  %vm2010_vm4 = vcmask 64512  }
  0xa5   :  { %3363 = vmatprep.subr.bf16.mxu0 %v3362_v6  ;;  %v3370_v16 = vpack.c.bf16 %v331_v15, %v330_v14  ;;  %v408_v20 = vld [vmem:[#allocation14] sm:$0xff]  ;;  %v409_v21 = vld [vmem:[#allocation14 + $0x8] sm:$0xff]  ;;  %v410_v25 = vld [vmem:[#allocation14 + $0x10] sm:$0xff]  ;;  %v554_v33 = vunpack.c.l.s4 %v3712_v32  ;;  %s3713_s20 = smov 32   ;;  %s3714_s29 = smov 48   ;;  %vm2983_vm5 = vcmask 392192  }
  0xa6   :  { %v3374_v22 = vpack.c.bf16 %v409_v21, %v408_v20  ;;  %v411_v26 = vld [vmem:[#allocation14 + $0x18] sm:$0xff]  ;;  %v523_v34 = vunpack.c.0.s8 %v522_v30  ;;  %vm2996_vm6 = vcmask 523264  }
  0xa7   :  { %3371 = vmatprep.subr.bf16.mxu1 %v3370_v16  ;;  %v3378_v27 = vpack.c.bf16 %v411_v26, %v410_v25  ;;  %v555_v39 = vunpack.c.0.s8 %v554_v33 }
  0xa8   :  { %3365 = vmatpush3.bf16.msra.mxu0 %v3362_v6  ;;  %3373 = vmatpush3.bf16.msra.mxu1 %v3370_v16  ;;  %v3973_v41 = vsub.s32 %v523_v34, %v525_v35 }
  0xa9   :  { %3367 = vmatprep.subr.bf16.mxu0 %v3366_v10  ;;  %3243 = vmatprep.subr.mxu1 %v332_v17  ;;  %v3977_v47 = vsub.s32 %v555_v39, %v525_v35 }
  0xab   :  { %3228 = vmatmul.mubr.msk.f32.vlgmr.msra.gmra.mrb[0].mxu0 %vm163_vm0, %v156_v11 }
  0xac   :  { %3369 = vmatpush3.bf16.msra.mxu0 %v3366_v10  ;;  %3236 = vmatprep.mubr.msk.f32.mxu0 %vm248_vm1, %v157_v9 }
  0xad   :  { %3234 = vmatprep.subr.mxu0 %v247_v12  ;;  %3244 = vmatpush3.msra.mxu1 %v332_v17 }
  0xae   :  { %3246 = vmatmul.mubr.msk.f32.vlgmr.msra.gmra.mrb[0].mxu1 %vm248_vm1, %v158_v13  ;;  %3259 = vmatprep.subr.mxu1 %v3709_v28 }
  0xaf   :  { %3261 = vmatprep.mubr.msk.f32.mxu1 %vm3710_vm2, %v3709_v28 }
  0xb0   :  { %3235 = vmatpush3.msra.mxu0 %v247_v12 }
  0xb1   :  { %3237 = vmatmul.mubr.msk.f32.vlgmr.msra.gmra.mrb[2].mxu0 %vm248_vm1, %v158_v13  ;;  %3375 = vmatprep.subr.bf16.mxu0 %v3374_v22 }
  0xb2   :  { %3256 = vmatprep.mubr.msk.f32.mxu0 %vm163_vm0, %v155_v5  ;;  %3377 = vmatpush3.bf16.msra.mxu0 %v3374_v22 }
  0xb3   :  { %3379 = vmatprep.subr.bf16.mxu0 %v3378_v27 }
  0xb6   :  { %3381 = vmatpush3.bf16.msra.mxu0 %v3378_v27 }
  0xb7   :  { %3264 = vmatprep.subr.mxu0 %v3709_v28 }
  0xb9   :  { %3257 = vmatmul.mubr.msk.f32.vlgmr.msra.gmra.mrb[4].mxu0 %vm163_vm0, %v156_v11 }
  0xba   :  { %3266 = vmatprep.mubr.msk.f32.mxu0 %vm3710_vm2, %v3709_v28 }
 0x17e   :  { %v3935_v18 = vpop.f32.mrb[0].mxu0 }
 0x17f   :  { %v236_v19 = vpop.f32.mrb[1].mxu0 }
 0x180   :  { %507 = vrot.lane.b32.xlu0 %v236_v19, %s3706_s8  ;;  %501 = vrot.lane.b32.xlu1 %v236_v19, %s3707_s28 }
 0x181   :  { %v3969_v38 = vpop.f32.mrb[0].mxu1 }
 0x182   :  { %v3971_v40 = vpop.f32.mrb[1].mxu1 }
 0x184   :  { %513 = vrot.lane.b32.xlu1 %v236_v19, %s3708_s2  ;;  %v3940_v23 = vpop.f32.mrb[2].mxu0 }
 0x185   :  { %v3942_v24 = vpop.f32.mrb[3].mxu0 }
 0x186   :  { %793 = vrot.lane.b32.xlu0 %v3942_v24, %s3707_s28 }
 0x188   :  { %805 = vrot.lane.b32.xlu1 %v3942_v24, %s3708_s2 }
 0x18a   :  { %799 = vrot.lane.b32.xlu0 %v3942_v24, %s3706_s8 }
 0x18c   :  { %801 = vrot.lane.b32.xlu1 %v3940_v23, %s3706_s8 }
 0x18e   :  { %795 = vrot.lane.b32.xlu0 %v3940_v23, %s3707_s28 }
 0x190   :  { %503 = vrot.lane.b32.xlu1 %v3935_v18, %s3707_s28 }
 0x192   :  { %807 = vrot.lane.b32.xlu0 %v3940_v23, %s3708_s2 }
 0x194   :  { %515 = vrot.lane.b32.xlu1 %v3935_v18, %s3708_s2 }
 0x196   :  { %509 = vrot.lane.b32.xlu0 %v3935_v18, %s3706_s8 }
 0x198   :  { %1085 = vrot.lane.b32.xlu1 %v3971_v40, %s3707_s28 }
 0x1f2   :  { %v508_v36 = vpop.permute.xlu0 %507  ;;  %v502_v37 = vpop.permute.xlu1 %501 }
 0x1f3   :  { %v519_v42 = vcombine.low %v236_v19, %v508_v36  ;;  %v520_v43 = vcombine.high %v236_v19, %v508_v36 }
 0x1f5   :  { %v527_v49 = vrot.slane %v519_v42, %v3973_v41  ;;  %v534_v50 = vrot.slane %v520_v43, %v3973_v41 }
 0x1f6   :  { %v514_v44 = vpop.permute.xlu1 %513 }
 0x1f7   :  { %v535_v45 = vcombine.low %v502_v37, %v514_v44  ;;  %v536_v46 = vcombine.high %v502_v37, %v514_v44 }
 0x1f8   :  { %v794_v48 = vpop.permute.xlu0 %793 }
 0x1f9   :  { %v543_v51 = vrot.slane %v535_v45, %v3973_v41  ;;  %v550_v52 = vrot.slane %v536_v46, %v3973_v41 }
 0x1fa   :  { %v806_v53 = vpop.permute.xlu1 %805 }
 0x1fb   :  { %v551_v54 = vcombine.low %v527_v49, %v543_v51  ;;  %v552_v55 = vcombine.high %v527_v49, %v543_v51  ;;  %v567_v56 = vcombine.low %v534_v50, %v550_v52  ;;  %v568_v57 = vcombine.high %v534_v50, %v550_v52 }
 0x1fc   :  { %v827_v58 = vcombine.low %v794_v48, %v806_v53  ;;  %v828_v59 = vcombine.high %v794_v48, %v806_v53  ;;  %v800_v60 = vpop.permute.xlu0 %799 }
 0x1fd   :  { %v559_v61 = vrot.slane %v551_v54, %v3977_v47  ;;  %v566_v62 = vrot.slane %v552_v55, %v3977_v47  ;;  %v575_v63 = vrot.slane %v567_v56, %v3977_v47  ;;  %v582_v0 = vrot.slane %v568_v57, %v3977_v47 }
 0x1fe   :  { %v811_v1 = vcombine.low %v3942_v24, %v800_v60  ;;  %v812_v2 = vcombine.high %v3942_v24, %v800_v60  ;;  %v802_v3 = vpop.permute.xlu1 %801  ;;  %v835_v8 = vrot.slane %v827_v58, %v3973_v41  ;;  %v842_v9 = vrot.slane %v828_v59, %v3973_v41 }
 0x1ff   :  { %v655_v4 = vcombine.low %v559_v61, %v566_v62  ;;  %v3111_v5 = vcombine.high %v559_v61, %v566_v62  ;;  %v671_v6 = vcombine.low %v575_v63, %v582_v0  ;;  %v3112_v7 = vcombine.high %v575_v63, %v582_v0 }
 0x200   :  { %v819_v10 = vrot.slane %v811_v1, %v3973_v41  ;;  %v826_v11 = vrot.slane %v812_v2, %v3973_v41  ;;  %v796_v12 = vpop.permute.xlu0 %795  ;;  %v879_v25 = vcombine.low %v3940_v23, %v802_v3  ;;  %v880_v26 = vcombine.high %v3940_v23, %v802_v3 }
 0x201   :  { %v3994_v13 = vrot.slane %v655_v4, %v3973_v41  ;;  %v3997_v14 = vrot.slane %v3111_v5, %v3973_v41  ;;  %v4000_v15 = vrot.slane %v671_v6, %v3973_v41  ;;  %v4003_v16 = vrot.slane %v3112_v7, %v3973_v41 }
 0x202   :  { %v843_v17 = vcombine.low %v819_v10, %v835_v8  ;;  %v844_v19 = vcombine.high %v819_v10, %v835_v8  ;;  %v859_v20 = vcombine.low %v826_v11, %v842_v9  ;;  %v860_v21 = vcombine.high %v826_v11, %v842_v9  ;;  %v504_v22 = vpop.permute.xlu1 %503 }
 0x203   :  { %v687_v24 = vcombine.low %v3994_v13, %v3997_v14  ;;  %v688_v33 = vcombine.high %v3994_v13, %v3997_v14  ;;  %v703_v34 = vcombine.low %v4000_v15, %v4003_v16  ;;  %v887_v43 = vrot.slane %v879_v25, %v3973_v41 }
 0x204   :  { %v851_v27 = vrot.slane %v843_v17, %v3977_v47  ;;  %v858_v29 = vrot.slane %v844_v19, %v3977_v47  ;;  %v867_v30 = vrot.slane %v859_v20, %v3977_v47  ;;  %v874_v31 = vrot.slane %v860_v21, %v3977_v47  ;;  %v808_v32 = vpop.permute.xlu0 %807 }
 0x205   :  { %v895_v35 = vcombine.low %v796_v12, %v808_v32  ;;  %v896_v36 = vcombine.high %v796_v12, %v808_v32  ;;  %v894_v44 = vrot.slane %v880_v26, %v3973_v41  ;;  %v704_v2 = vcombine.high %v4000_v15, %v4003_v16 }
 0x206   :  { %v947_v37 = vcombine.low %v851_v27, %v858_v29  ;;  %v3115_v39 = vcombine.high %v851_v27, %v858_v29  ;;  %v963_v23 = vcombine.low %v867_v30, %v874_v31  ;;  %v3116_v42 = vcombine.high %v867_v30, %v874_v31  ;;  %v516_v48 = vpop.permute.xlu1 %515 }
 0x207   :  { %v903_v45 = vrot.slane %v895_v35, %v3973_v41  ;;  %v910_v46 = vrot.slane %v896_v36, %v3973_v41  ;;  %v603_v60 = vcombine.low %v504_v22, %v516_v48  ;;  %v604_v61 = vcombine.high %v504_v22, %v516_v48 }
 0x208   :  { %v954_v49 = vrot.slane %v947_v37, %v3973_v41  ;;  %v962_v50 = vrot.slane %v3115_v39, %v3973_v41  ;;  %v4024_v51 = vrot.slane %v963_v23, %v3973_v41  ;;  %v4027_v52 = vrot.slane %v3116_v42, %v3973_v41  ;;  %v510_v57 = vpop.permute.xlu0 %509 }
 0x209   :  { %v911_v53 = vcombine.low %v887_v43, %v903_v45  ;;  %v912_v54 = vcombine.high %v887_v43, %v903_v45  ;;  %v927_v55 = vcombine.low %v894_v44, %v910_v46  ;;  %v928_v56 = vcombine.high %v894_v44, %v910_v46 }
 0x20a   :  { %v979_v58 = vcombine.low %v954_v49, %v962_v50  ;;  %v995_v59 = vcombine.low %v4024_v51, %v4027_v52  ;;  %v980_v3 = vcombine.high %v954_v49, %v962_v50  ;;  %v587_v4 = vcombine.low %v3935_v18, %v510_v57 }
 0x20b   :  { %v919_v62 = vrot.slane %v911_v53, %v3977_v47  ;;  %v926_v63 = vrot.slane %v912_v54, %v3977_v47  ;;  %v935_v0 = vrot.slane %v927_v55, %v3977_v47  ;;  %v942_v1 = vrot.slane %v928_v56, %v3977_v47 }
 0x20c   :  { %v588_v5 = vcombine.high %v3935_v18, %v510_v57  ;;  %v611_v10 = vrot.slane %v603_v60, %v3973_v41  ;;  %v618_v11 = vrot.slane %v604_v61, %v3973_v41  ;;  %v595_v12 = vrot.slane %v587_v4, %v3973_v41 }
 0x20d   :  { %v1015_v6 = vcombine.low %v919_v62, %v926_v63  ;;  %v3117_v7 = vcombine.high %v919_v62, %v926_v63  ;;  %v1031_v8 = vcombine.low %v935_v0, %v942_v1  ;;  %v3118_v9 = vcombine.high %v935_v0, %v942_v1 }
 0x20e   :  { %v602_v17 = vrot.slane %v588_v5, %v3973_v41  ;;  %v987_v18 = vrot.slane %v979_v58, %v3977_v47  ;;  %v1003_v16 = vrot.slane %v995_v59, %v3977_v47  ;;  %v619_v20 = vcombine.low %v595_v12, %v611_v10 }
 0x20f   :  { %v4044_v19 = vrot.slane %v1015_v6, %v3973_v41  ;;  %v4047_v15 = vrot.slane %v3117_v7, %v3973_v41  ;;  %v620_v21 = vcombine.high %v595_v12, %v611_v10  ;;  %v996_v26 = vcombine.high %v4024_v51, %v4027_v52 }
 0x210   :  { %v635_v22 = vcombine.low %v602_v17, %v618_v11  ;;  %v636_v25 = vcombine.high %v602_v17, %v618_v11  ;;  %v1038_v27 = vrot.slane %v1031_v8, %v3973_v41  ;;  %v1046_v29 = vrot.slane %v3118_v9, %v3973_v41 }
 0x211   :  { %v1047_v30 = vcombine.low %v4044_v19, %v4047_v15  ;;  %v627_v31 = vrot.slane %v619_v20, %v3977_v47  ;;  %v634_v32 = vrot.slane %v620_v21, %v3977_v47  ;;  %v1011_v37 = vcombine.low %v987_v18, %v1003_v16  ;;  %v3123_v20 = vld [vmem:[#allocation7] ss:$0 sm:$0xff]  ;;  %v1377_v21 = vld [vmem:[#allocation8] sm:$0xff] }
 0x212   :  { %v643_v35 = vrot.slane %v635_v22, %v3977_v47  ;;  %v650_v36 = vrot.slane %v636_v25, %v3977_v47  ;;  %v1012_v39 = vcombine.high %v987_v18, %v1003_v16  ;;  %v695_v23 = vrot.slane %v687_v24, %v3977_v47  ;;  %v4127_v18 = vpop.f32.mrb[4].mxu0  ;;  %v1378_v22 = vld [vmem:[#allocation8 + $0x8] sm:$0xff] }
 0x213   :  { %v711_v42 = vrot.slane %v703_v34, %v3977_v47  ;;  %v723_v43 = vcombine.low %v627_v31, %v634_v32  ;;  %v3113_v44 = vcombine.high %v627_v31, %v634_v32  ;;  %v1063_v48 = vcombine.low %v1038_v27, %v1046_v29  ;;  %3260 = vmatpush3.xpose.msk.msra.mxu1 %vm1401_vm3, %v1011_v37  ;;  %v4129_v16 = vpop.f32.mrb[5].mxu0  ;;  %v1380_v37 = vld [vmem:[#allocation8 + $0x18] sm:$0xff] }
 0x214   :  { %v739_v45 = vcombine.low %v643_v35, %v650_v36  ;;  %v3114_v46 = vcombine.high %v643_v35, %v650_v36  ;;  %3265 = vmatpush3.xpose.msk.msra.mxu0 %vm1401_vm3, %v1012_v39  ;;  %v994_v50 = vrot.slane %v980_v3, %v3977_v47  ;;  %3269 = vmatprep.subr.mxu1 %v3709_v28 }
 0x215   :  { %v719_v49 = vcombine.low %v695_v23, %v711_v42  ;;  %v730_v51 = vrot.slane %v723_v43, %v3973_v41  ;;  %v738_v52 = vrot.slane %v3113_v44, %v3973_v41  ;;  %v720_v53 = vcombine.high %v695_v23, %v711_v42  ;;  %3274 = vmatprep.subr.mxu0 %v3709_v28  ;;  %v3124_v43 = vld [vmem:[#allocation7 + $0x1] ss:$0 sm:$0xff] }
 0x216   :  { %v746_v24 = vrot.slane %v739_v45, %v3973_v41  ;;  %v754_v34 = vrot.slane %v3114_v46, %v3973_v41  ;;  %v1010_v54 = vrot.slane %v996_v26, %v3977_v47  ;;  %v702_v55 = vrot.slane %v688_v33, %v3977_v47 }
 0x217   :  { %v718_v56 = vrot.slane %v704_v2, %v3977_v47  ;;  %v1048_v57 = vcombine.high %v4044_v19, %v4047_v15  ;;  %v755_v58 = vcombine.low %v730_v51, %v738_v52  ;;  %3262 = vmatmul.mubr.msk.f32.vlgmr.msra.gmra.mrb[2].mxu1 %vm1401_vm3, %v719_v49  ;;  %v1055_v60 = vrot.slane %v1047_v30, %v3977_v47 }
 0x218   :  { %v771_v59 = vcombine.low %v746_v24, %v754_v34  ;;  %v1064_v61 = vcombine.high %v1038_v27, %v1046_v29  ;;  %3267 = vmatmul.mubr.msk.f32.vlgmr.msra.gmra.mrb[6].mxu0 %vm1401_vm3, %v720_v53  ;;  %v1013_v62 = vcombine.low %v994_v50, %v1010_v54  ;;  %v1014_v63 = vcombine.high %v994_v50, %v1010_v54  ;;  %v1379_v29 = vld [vmem:[#allocation8 + $0x10] sm:$0xff] }
 0x219   :  { %3271 = vmatprep.mubr.msk.f32.mxu1 %vm3710_vm2, %v3709_v28  ;;  %3276 = vmatprep.mubr.msk.f32.mxu0 %vm3710_vm2, %v3709_v28  ;;  %v1071_v13 = vrot.slane %v1063_v48, %v3977_v47  ;;  %v763_v14 = vrot.slane %v755_v58, %v3977_v47  ;;  %v756_v0 = vcombine.high %v730_v51, %v738_v52 }
 0x21a   :  { %v779_v33 = vrot.slane %v771_v59, %v3977_v47  ;;  %v772_v1 = vcombine.high %v746_v24, %v754_v34  ;;  %3270 = vmatpush3.xpose.msk.msra.mxu1 %vm1401_vm3, %v1013_v62  ;;  %3275 = vmatpush3.xpose.msk.msra.mxu0 %vm1401_vm3, %v1014_v63  ;;  %v721_v2 = vcombine.low %v702_v55, %v718_v56 }
 0x21b   :  { %v722_v3 = vcombine.high %v702_v55, %v718_v56  ;;  %3279 = vmatprep.subr.mxu1 %v3709_v28  ;;  %3284 = vmatprep.subr.mxu0 %v3709_v28  ;;  %v1079_v4 = vcombine.low %v1055_v60, %v1071_v13  ;;  %v1080_v5 = vcombine.high %v1055_v60, %v1071_v13 }
 0x21c   :  { %v1062_v6 = vrot.slane %v1048_v57, %v3977_v47  ;;  %v1078_v7 = vrot.slane %v1064_v61, %v3977_v47  ;;  %v787_v8 = vcombine.low %v763_v14, %v779_v33  ;;  %v788_v9 = vcombine.high %v763_v14, %v779_v33 }
 0x21d   :  { %3272 = vmatmul.mubr.msk.f32.vlgmr.msra.gmra.mrb[4].mxu1 %vm1401_vm3, %v721_v2  ;;  %3277 = vmatmul.mubr.msk.f32.vlgmr.msra.gmra.mrb[8].mxu0 %vm1401_vm3, %v722_v3  ;;  %v770_v10 = vrot.slane %v756_v0, %v3977_v47  ;;  %v786_v11 = vrot.slane %v772_v1, %v3977_v47  ;;  %v1393_v25 = vadd.f32 %v3123_v20, %v1377_v21 }
 0x21e   :  { %3280 = vmatpush3.xpose.msk.msra.mxu1 %vm1401_vm3, %v1079_v4  ;;  %3285 = vmatpush3.xpose.msk.msra.mxu0 %vm1401_vm3, %v1080_v5  ;;  %v1081_v12 = vcombine.low %v1062_v6, %v1078_v7  ;;  %v1082_v17 = vcombine.high %v1062_v6, %v1078_v7  ;;  %v1394_v26 = vadd.f32 %v3123_v20, %v1378_v22  ;;  %v1086_v5 = vpop.permute.xlu1 %1085 }
 0x21f   :  { %3281 = vmatprep.mubr.msk.f32.mxu1 %vm3710_vm2, %v3709_v28  ;;  %3286 = vmatprep.mubr.msk.f32.mxu0 %vm3710_vm2, %v3709_v28  ;;  %v789_v19 = vcombine.low %v770_v10, %v786_v11  ;;  %v790_v15 = vcombine.high %v770_v10, %v786_v11  ;;  %v1395_v23 = vadd.f32 %v3123_v20, %v1379_v29 }
 0x220   :  { %3289 = vmatprep.subr.mxu1 %v3709_v28  ;;  %3294 = vmatprep.subr.mxu0 %v3709_v28  ;;  %v1396_v44 = vadd.f32 %v3123_v20, %v1380_v37  ;;  %v1397_v51 = vadd.f32 %v3124_v43, %v1377_v21  ;;  %v1398_v34 = vadd.f32 %v3124_v43, %v1378_v22 }
 0x221   :  { %3282 = vmatmul.mubr.msk.f32.vlgmr.msra.gmra.mrb[6].mxu1 %vm1401_vm3, %v787_v8  ;;  %3287 = vmatmul.mubr.msk.f32.vlgmr.msra.gmra.mrb[10].mxu0 %vm1401_vm3, %v788_v9  ;;  %v1399_v58 = vadd.f32 %v3124_v43, %v1379_v29  ;;  %v1400_v62 = vadd.f32 %v3124_v43, %v1380_v37 }
 0x222   :  { %3290 = vmatpush3.xpose.msk.msra.mxu1 %vm1401_vm3, %v1081_v12  ;;  %3295 = vmatpush3.xpose.msk.msra.mxu0 %vm1401_vm3, %v1082_v17 }
 0x223   :  { %3291 = vmatprep.mubr.msk.f32.mxu1 %vm3710_vm2, %v3709_v28  ;;  %3296 = vmatprep.mubr.msk.f32.mxu0 %vm3710_vm2, %v3709_v28 }
 0x224   :  { %3299 = vmatprep.subr.mxu1 %v3709_v28  ;;  %3304 = vmatprep.subr.mxu0 %v3709_v28 }
 0x225   :  { %3292 = vmatmul.mubr.msk.f32.vlgmr.msra.gmra.mrb[8].mxu1 %vm1401_vm3, %v789_v19  ;;  %3297 = vmatmul.mubr.msk.f32.vlgmr.msra.gmra.mrb[12].mxu0 %vm1401_vm3, %v790_v15 }
 0x226   :  { %3301 = vmatprep.mubr.msk.f32.mxu1 %vm3710_vm2, %v3709_v28  ;;  %3306 = vmatprep.mubr.msk.f32.mxu0 %vm3710_vm2, %v3709_v28 }
 0x2ea   :  { %v1474_v27 = vpop.f32.mrb[2].mxu1 }
 0x2eb   :  { %v1475_v30 = vadd.f32 %v1474_v27, %v1393_v25  ;;  %v1550_v31 = vpop.f32.mrb[6].mxu0  ;;  %v3263_v32 = vpop.f32.mrb[3].mxu1 }
 0x2ec   :  { %v1551_v35 = vadd.f32 %v1550_v31, %v1394_v26  ;;  %v3268_v36 = vpop.f32.mrb[7].mxu0 }
 0x2ed   :  { %v2011_v39 = vsel %vm2010_vm4, %v1475_v30, -inf }
 0x2ee   :  { %2012 = vmax.xlane.f32.xlu0 %v2011_v39  ;;  %v2014_v42 = vsel %vm2010_vm4, %v1551_v35, -inf }
 0x2ef   :  { %2015 = vmax.xlane.f32.xlu1 %v2014_v42 }
 0x2f0   :  { %v1626_v45 = vpop.f32.mrb[4].mxu1  ;;  %v1702_v46 = vpop.f32.mrb[8].mxu0 }
 0x2f1   :  { %v1627_v48 = vadd.f32 %v1626_v45, %v1395_v23  ;;  %v3273_v49 = vpop.f32.mrb[5].mxu1  ;;  %v3278_v50 = vpop.f32.mrb[9].mxu0  ;;  %v1703_v52 = vadd.f32 %v1702_v46, %v1396_v44 }
 0x2f3   :  { %v2017_v24 = vsel %vm2010_vm4, %v1627_v48, -inf  ;;  %v2020_v60 = vsel %vm2010_vm4, %v1703_v52, -inf }
 0x2f4   :  { %2018 = vmax.xlane.f32.xlu0 %v2017_v24  ;;  %v1778_v53 = vpop.f32.mrb[6].mxu1  ;;  %v1854_v54 = vpop.f32.mrb[10].mxu0 }
 0x2f5   :  { %v1779_v55 = vadd.f32 %v1778_v53, %v1397_v51  ;;  %v3283_v56 = vpop.f32.mrb[7].mxu1  ;;  %v3288_v57 = vpop.f32.mrb[11].mxu0  ;;  %v1855_v59 = vadd.f32 %v1854_v54, %v1398_v34 }
 0x2f7   :  { %v2023_v61 = vsel %vm2010_vm4, %v1779_v55, -inf  ;;  %v2026_v2 = vsel %vm2010_vm4, %v1855_v59, -inf }
 0x2f8   :  { %2021 = vmax.xlane.f32.xlu0 %v2020_v60  ;;  %v1930_v63 = vpop.f32.mrb[8].mxu1  ;;  %2024 = vmax.xlane.f32.xlu1 %v2023_v61  ;;  %v2006_v13 = vpop.f32.mrb[12].mxu0 }
 0x2f9   :  { %v1931_v14 = vadd.f32 %v1930_v63, %v1399_v58  ;;  %v3293_v33 = vpop.f32.mrb[9].mxu1  ;;  %v3298_v0 = vpop.f32.mrb[13].mxu0  ;;  %v4136_v1 = vadd.f32 %v2006_v13, %v1400_v62 }
 0x2fb   :  { %v2029_v3 = vsel %vm2010_vm4, %v1931_v14, -inf  ;;  %v2032_v4 = vsel %vm2010_vm4, %v4136_v1, -inf }
 0x2fc   :  { %2027 = vmax.xlane.f32.xlu0 %v2026_v2  ;;  %2030 = vmax.xlane.f32.xlu1 %v2029_v3 }
 0x300   :  { %2033 = vmax.xlane.f32.xlu0 %v2032_v4 }
 0x30d   :  { %1097 = vrot.lane.b32.xlu1 %v3971_v40, %s3708_s2 }
 0x316   :  { %1091 = vrot.lane.b32.xlu0 %v3971_v40, %s3706_s8 }
 0x37b   :  { %v2013_v6 = vpop.xlane.xlu0 %2012 }
 0x37c   :  { %v2035_v7 = vsub.f32 %v1475_v30, %v2013_v6  ;;  %v2016_v8 = vpop.xlane.xlu1 %2015 }
 0x37d   :  { %v2036_v9 = vsub.f32 %v1551_v35, %v2016_v8 }
 0x37e   :  { %v2043_v10 = vmul.f32 1.442695, %v2035_v7 }
 0x37f   :  { %v2045_v11 = vmul.f32 1.442695, %v2036_v9 }
 0x380   :  { %3421 = vpow2.f32 %v2043_v10 }
 0x381   :  { %3423 = vpow2.f32 %v2045_v11  ;;  %v2019_v12 = vpop.xlane.xlu0 %2018 }
 0x382   :  { %v2037_v17 = vsub.f32 %v1627_v48, %v2019_v12 }
 0x384   :  { %v2047_v19 = vmul.f32 1.442695, %v2037_v17 }
 0x385   :  { %v2022_v15 = vpop.xlane.xlu0 %2021  ;;  %v2025_v20 = vpop.xlane.xlu1 %2024 }
 0x386   :  { %3425 = vpow2.f32 %v2047_v19  ;;  %v2038_v21 = vsub.f32 %v1703_v52, %v2022_v15  ;;  %v2039_v22 = vsub.f32 %v1779_v55, %v2025_v20 }
 0x388   :  { %v2049_v25 = vmul.f32 1.442695, %v2038_v21  ;;  %v2051_v26 = vmul.f32 1.442695, %v2039_v22 }
 0x389   :  { %v2028_v27 = vpop.xlane.xlu0 %2027  ;;  %v2031_v29 = vpop.xlane.xlu1 %2030 }
 0x38a   :  { %v4146_v31 = vpop.eup %3421  ;;  %3427 = vpow2.f32 %v2049_v25  ;;  %v2040_v30 = vsub.f32 %v1855_v59, %v2028_v27  ;;  %v2041_v32 = vsub.f32 %v1931_v14, %v2031_v29 }
 0x38b   :  { %v4148_v35 = vpop.eup %3423  ;;  %3429 = vpow2.f32 %v2051_v26  ;;  %v2059_v36 = vsel %vm2010_vm4, %v4146_v31, 0.0 }
 0x38c   :  { %v2053_v37 = vmul.f32 1.442695, %v2040_v30  ;;  %v2055_v39 = vmul.f32 1.442695, %v2041_v32  ;;  %2060 = vadd.xlane.f32.xlu1 %v2059_v36  ;;  %v2062_v23 = vsel %vm2010_vm4, %v4148_v35, 0.0 }
 0x38d   :  { %v4154_v42 = vpop.xlane.xlu0 %2033  ;;  %v1098_v43 = vpop.permute.xlu1 %1097  ;;  %2063 = vadd.xlane.f32.xlu0 %v2062_v23 }
 0x38e   :  { %3431 = vpow2.f32 %v2053_v37  ;;  %v1119_v45 = vcombine.low %v1086_v5, %v1098_v43  ;;  %v1120_v46 = vcombine.high %v1086_v5, %v1098_v43  ;;  %v2042_v30 = vsub.f32 %v4136_v1, %v4154_v42 }
 0x38f   :  { %3433 = vpow2.f32 %v2055_v39 }
 0x390   :  { %v4156_v44 = vpop.eup %3425  ;;  %v1127_v24 = vrot.slane %v1119_v45, %v3973_v41  ;;  %v1134_v34 = vrot.slane %v1120_v46, %v3973_v41  ;;  %v2057_v32 = vmul.f32 1.442695, %v2042_v30 }
 0x391   :  { %v1092_v48 = vpop.permute.xlu0 %1091  ;;  %v2065_v49 = vsel %vm2010_vm4, %v4156_v44, 0.0 }
 0x392   :  { %v1103_v50 = vcombine.low %v3971_v40, %v1092_v48  ;;  %v1104_v51 = vcombine.high %v3971_v40, %v1092_v48  ;;  %2066 = vadd.xlane.f32.xlu1 %v2065_v49  ;;  %3435 = vpow2.f32 %v2057_v32 }
 0x394   :  { %v4162_v52 = vpop.eup %3427  ;;  %v1111_v53 = vrot.slane %v1103_v50, %v3973_v41  ;;  %v1118_v54 = vrot.slane %v1104_v51, %v3973_v41 }
 0x395   :  { %v4168_v55 = vpop.eup %3429  ;;  %v2068_v56 = vsel %vm2010_vm4, %v4162_v52, 0.0 }
 0x396   :  { %v1135_v57 = vcombine.low %v1111_v53, %v1127_v24  ;;  %v1136_v58 = vcombine.high %v1111_v53, %v1127_v24  ;;  %v1151_v59 = vcombine.low %v1118_v54, %v1134_v34  ;;  %v1152_v40 = vcombine.high %v1118_v54, %v1134_v34  ;;  %2069 = vadd.xlane.f32.xlu0 %v2068_v56 }
 0x397   :  { %v2071_v60 = vsel %vm2010_vm4, %v4168_v55, 0.0 }
 0x398   :  { %v4174_v61 = vpop.eup %3431  ;;  %v1143_v62 = vrot.slane %v1135_v57, %v3977_v47  ;;  %v1150_v63 = vrot.slane %v1136_v58, %v3977_v47  ;;  %v1159_v13 = vrot.slane %v1151_v59, %v3977_v47  ;;  %v1166_v14 = vrot.slane %v1152_v40, %v3977_v47  ;;  %2072 = vadd.xlane.f32.xlu1 %v2071_v60 }
 0x399   :  { %v2074_v33 = vsel %vm2010_vm4, %v4174_v61, 0.0  ;;  %v4182_v0 = vpop.eup %3433 }
 0x39a   :  { %v1239_v2 = vcombine.low %v1143_v62, %v1150_v63  ;;  %v3119_v3 = vcombine.high %v1143_v62, %v1150_v63  ;;  %v1255_v4 = vcombine.low %v1159_v13, %v1166_v14  ;;  %v3120_v5 = vcombine.high %v1159_v13, %v1166_v14  ;;  %2075 = vadd.xlane.f32.xlu0 %v2074_v33 }
 0x39b   :  { %v2077_v10 = vsel %vm2010_vm4, %v4182_v0, 0.0 }
 0x39c   :  { %v1246_v6 = vrot.slane %v1239_v2, %v3973_v41  ;;  %v1254_v7 = vrot.slane %v3119_v3, %v3973_v41  ;;  %v1262_v8 = vrot.slane %v1255_v4, %v3973_v41  ;;  %v1270_v9 = vrot.slane %v3120_v5, %v3973_v41  ;;  %v4202_v36 = vpop.eup %3435 }
 0x39d   :  { %v2080_v37 = vsel %vm2010_vm4, %v4202_v36, 0.0 }
 0x39e   :  { %2078 = vadd.xlane.f32.xlu0 %v2077_v10  ;;  %v1271_v11 = vcombine.low %v1246_v6, %v1254_v7  ;;  %v1287_v12 = vcombine.low %v1262_v8, %v1270_v9  ;;  %v1272_v17 = vcombine.high %v1246_v6, %v1254_v7  ;;  %v1288_v19 = vcombine.high %v1262_v8, %v1270_v9 }
 0x3a0   :  { %v1279_v15 = vrot.slane %v1271_v11, %v3977_v47  ;;  %v1295_v20 = vrot.slane %v1287_v12, %v3977_v47  ;;  %v1286_v21 = vrot.slane %v1272_v17, %v3977_v47  ;;  %v1302_v22 = vrot.slane %v1288_v19, %v3977_v47 }
 0x3a2   :  { %v1303_v25 = vcombine.low %v1279_v15, %v1295_v20  ;;  %v1304_v26 = vcombine.high %v1279_v15, %v1295_v20  ;;  %v1305_v27 = vcombine.low %v1286_v21, %v1302_v22  ;;  %v1306_v29 = vcombine.high %v1286_v21, %v1302_v22 }
 0x3a4   :  { %3300 = vmatpush3.msra.mxu1 %v1303_v25  ;;  %3305 = vmatpush3.msra.mxu0 %v1304_v26 }
 0x3a5   :  { %3309 = vmatprep.subr.mxu1 %v3709_v28  ;;  %3314 = vmatprep.subr.mxu0 %v3709_v28 }
 0x3a9   :  { %1093 = vrot.lane.b32.xlu1 %v3969_v38, %s3706_s8 }
 0x3b4   :  { %1087 = vrot.lane.b32.xlu0 %v3969_v38, %s3707_s28 }
 0x3cd   :  { %2081 = vadd.xlane.f32.xlu1 %v2080_v37 }
 0x3de   :  { %1099 = vrot.lane.b32.xlu1 %v3969_v38, %s3708_s2 }
 0x419   :  { %v2061_v39 = vpop.xlane.xlu1 %2060 }
 0x41a   :  { %3437 = vrcp.f32 %v2061_v39  ;;  %v2064_v23 = vpop.xlane.xlu0 %2063 }
 0x41b   :  { %3439 = vrcp.f32 %v2064_v23 }
 0x41f   :  { %v2067_v43 = vpop.xlane.xlu1 %2066 }
 0x420   :  { %3441 = vrcp.f32 %v2067_v43 }
 0x423   :  { %v2070_v45 = vpop.xlane.xlu0 %2069 }
 0x424   :  { %v3438_v46 = vpop.eup %3437  ;;  %3443 = vrcp.f32 %v2070_v45 }
 0x425   :  { %v3440_v1 = vpop.eup %3439  ;;  %v2084_v42 = vmul.f32 %v3438_v46, %v4146_v31  ;;  %v2073_v51 = vpop.xlane.xlu1 %2072 }
 0x426   :  { %v2086_v48 = vmul.f32 %v3440_v1, %v4148_v35  ;;  %3445 = vrcp.f32 %v2073_v51 }
 0x427   :  { %3302 = vmatmul.mubr.msk.f32.vlgmr.msra.gmra.mrb[10].mxu1 %vm2010_vm4, %v2084_v42  ;;  %v2076_v24 = vpop.xlane.xlu0 %2075 }
 0x428   :  { %3307 = vmatmul.mubr.msk.f32.vlgmr.msra.gmra.mrb[14].mxu0 %vm2010_vm4, %v2086_v48  ;;  %3310 = vmatpush3.msra.mxu1 %v1305_v27  ;;  %3447 = vrcp.f32 %v2076_v24 }
 0x429   :  { %3315 = vmatpush3.msra.mxu0 %v1306_v29  ;;  %3311 = vmatprep.mubr.msk.f32.mxu1 %vm3710_vm2, %v3709_v28  ;;  %v1094_v34 = vpop.permute.xlu1 %1093 }
 0x42a   :  { %v3442_v49 = vpop.eup %3441  ;;  %3316 = vmatprep.mubr.msk.f32.mxu0 %vm3710_vm2, %v3709_v28  ;;  %3319 = vmatprep.subr.mxu1 %v3709_v28  ;;  %v1171_v54 = vcombine.low %v3969_v38, %v1094_v34  ;;  %v1172_v56 = vcombine.high %v3969_v38, %v1094_v34 }
 0x42b   :  { %v2088_v50 = vmul.f32 %v3442_v49, %v4156_v44  ;;  %3324 = vmatprep.subr.mxu0 %v3709_v28  ;;  %v2079_v53 = vpop.xlane.xlu0 %2078 }
 0x42c   :  { %v1186_v60 = vrot.slane %v1172_v56, %v3973_v41  ;;  %3449 = vrcp.f32 %v2079_v53 }
 0x42d   :  { %3312 = vmatmul.mubr.msk.f32.vlgmr.msra.gmra.mrb[12].mxu1 %vm2010_vm4, %v2088_v50 }
 0x42e   :  { %v3444_v31 = vpop.eup %3443  ;;  %3321 = vmatprep.mubr.msk.f32.mxu1 %vm3710_vm2, %v3709_v28 }
 0x42f   :  { %v2090_v35 = vmul.f32 %v3444_v31, %v4162_v52  ;;  %v1088_v57 = vpop.permute.xlu0 %1087  ;;  %v1179_v52 = vrot.slane %v1171_v54, %v3973_v41 }
 0x430   :  { %v3446_v19 = vpop.eup %3445 }
 0x431   :  { %3317 = vmatmul.mubr.msk.f32.vlgmr.msra.gmra.mrb[16].mxu0 %vm2010_vm4, %v2090_v35  ;;  %v2092_v43 = vmul.f32 %v3446_v19, %v4168_v55 }
 0x432   :  { %3326 = vmatprep.mubr.msk.f32.mxu0 %vm3710_vm2, %v3709_v28  ;;  %v3448_v25 = vpop.eup %3447 }
 0x433   :  { %v2094_v45 = vmul.f32 %v3448_v25, %v4174_v61  ;;  %v2989_v25 = vld [vmem:[#allocation16 + $0x8] sm:$0xff] }
 0x436   :  { %v3450_v29 = vpop.eup %3449 }
 0x437   :  { %v2096_v42 = vmul.f32 %v3450_v29, %v4182_v0  ;;  %v2991_v29 = vld [vmem:[#allocation16 + $0x18] sm:$0xff] }
 0x45a   :  { %v2082_v44 = vpop.xlane.xlu1 %2081 }
 0x45b   :  { %3451 = vrcp.f32 %v2082_v44 }
 0x45e   :  { %v1100_v58 = vpop.permute.xlu1 %1099 }
 0x45f   :  { %v1187_v59 = vcombine.low %v1088_v57, %v1100_v58  ;;  %v1188_v40 = vcombine.high %v1088_v57, %v1100_v58 }
 0x461   :  { %v1195_v62 = vrot.slane %v1187_v59, %v3973_v41  ;;  %v1202_v63 = vrot.slane %v1188_v40, %v3973_v41 }
 0x463   :  { %v1203_v13 = vcombine.low %v1179_v52, %v1195_v62  ;;  %v1204_v14 = vcombine.high %v1179_v52, %v1195_v62  ;;  %v1219_v33 = vcombine.low %v1186_v60, %v1202_v63  ;;  %v1220_v2 = vcombine.high %v1186_v60, %v1202_v63 }
 0x465   :  { %v1211_v38 = vrot.slane %v1203_v13, %v3977_v47  ;;  %v1218_v3 = vrot.slane %v1204_v14, %v3977_v47  ;;  %v1227_v4 = vrot.slane %v1219_v33, %v3977_v47  ;;  %v1234_v5 = vrot.slane %v1220_v2, %v3977_v47  ;;  %v3452_v23 = vpop.eup %3451 }
 0x466   :  { %v2098_v48 = vmul.f32 %v3452_v23, %v4202_v36 }
 0x467   :  { %v1307_v6 = vcombine.low %v1211_v38, %v1218_v3  ;;  %v3121_v7 = vcombine.high %v1211_v38, %v1218_v3  ;;  %v1323_v8 = vcombine.low %v1227_v4, %v1234_v5  ;;  %v3122_v9 = vcombine.high %v1227_v4, %v1234_v5 }
 0x469   :  { %v1314_v10 = vrot.slane %v1307_v6, %v3973_v41  ;;  %v1322_v11 = vrot.slane %v3121_v7, %v3973_v41  ;;  %v1330_v12 = vrot.slane %v1323_v8, %v3973_v41  ;;  %v1338_v17 = vrot.slane %v3122_v9, %v3973_v41 }
 0x46b   :  { %v1339_v15 = vcombine.low %v1314_v10, %v1322_v11  ;;  %v1355_v20 = vcombine.low %v1330_v12, %v1338_v17  ;;  %v1340_v21 = vcombine.high %v1314_v10, %v1322_v11  ;;  %v1356_v22 = vcombine.high %v1330_v12, %v1338_v17 }
 0x46d   :  { %v1347_v26 = vrot.slane %v1339_v15, %v3977_v47  ;;  %v1363_v27 = vrot.slane %v1355_v20, %v3977_v47  ;;  %v1354_v30 = vrot.slane %v1340_v21, %v3977_v47  ;;  %v1370_v32 = vrot.slane %v1356_v22, %v3977_v47  ;;  %v2988_v22 = vld [vmem:[#allocation16] sm:$0xff] }
 0x46f   :  { %v1371_v37 = vcombine.low %v1347_v26, %v1363_v27  ;;  %v1372_v39 = vcombine.high %v1347_v26, %v1363_v27  ;;  %v1373_v46 = vcombine.low %v1354_v30, %v1370_v32  ;;  %v1374_v1 = vcombine.high %v1354_v30, %v1370_v32  ;;  %v2990_v26 = vld [vmem:[#allocation16 + $0x10] sm:$0xff] }
 0x470   :  { %v3382_v27 = vpack.c.bf16 %v2989_v25, %v2988_v22  ;;  %v3386_v30 = vpack.c.bf16 %v2991_v29, %v2990_v26 }
 0x471   :  { %3320 = vmatpush3.msra.mxu1 %v1371_v37  ;;  %3325 = vmatpush3.msra.mxu0 %v1372_v39 }
 0x472   :  { %3322 = vmatmul.mubr.msk.f32.vlgmr.msra.gmra.mrb[14].mxu1 %vm2010_vm4, %v2092_v43  ;;  %3327 = vmatmul.mubr.msk.f32.vlgmr.msra.gmra.mrb[18].mxu0 %vm2010_vm4, %v2094_v45 }
 0x473   :  { %3329 = vmatprep.subr.mxu1 %v3709_v28  ;;  %3334 = vmatprep.subr.mxu0 %v3709_v28 }
 0x474   :  { %3330 = vmatpush3.msra.mxu1 %v1373_v46  ;;  %3335 = vmatpush3.msra.mxu0 %v1374_v1 }
 0x475   :  { %3331 = vmatprep.mubr.msk.f32.mxu1 %vm3710_vm2, %v3709_v28  ;;  %3336 = vmatprep.mubr.msk.f32.mxu0 %vm3710_vm2, %v3709_v28 }
 0x476   :  { %3332 = vmatmul.mubr.msk.f32.vlgmr.msra.gmra.mrb[16].mxu1 %vm2010_vm4, %v2096_v42  ;;  %3337 = vmatmul.mubr.msk.f32.vlgmr.msra.gmra.mrb[20].mxu0 %vm2010_vm4, %v2098_v48 }
 0x477   :  { %3383 = vmatprep.subr.bf16.mxu1 %v3382_v27 }
 0x478   :  { %3385 = vmatpush3.bf16.msra.mxu1 %v3382_v27 }
 0x479   :  { %3387 = vmatprep.subr.bf16.mxu1 %v3386_v30 }
 0x47c   :  { %3389 = vmatpush3.bf16.msra.mxu1 %v3386_v30 }
 0x4fa   :  { %v2168_v55 = vpop.f32.mrb[10].mxu1 }
 0x4fb   :  { %v2241_v61 = vpop.f32.mrb[14].mxu0  ;;  %v3303_v49 = vpop.f32.mrb[11].mxu1 }
 0x4fc   :  { %v3308_v50 = vpop.f32.mrb[15].mxu0 }
 0x500   :  { %v2314_v31 = vpop.f32.mrb[12].mxu1 }
 0x501   :  { %v2683_v0 = vcombine.low %v2168_v55, %v2314_v31  ;;  %v2684_v35 = vcombine.high %v2168_v55, %v2314_v31  ;;  %v3313_v36 = vpop.f32.mrb[13].mxu1 }
 0x503   :  { %v2691_v44 = vrot.slane %v2683_v0, %v3973_v41  ;;  %v2698_v28 = vrot.slane %v2684_v35, %v3973_v41 }
 0x504   :  { %v2387_v51 = vpop.f32.mrb[16].mxu0 }
 0x505   :  { %v2699_v24 = vcombine.low %v2241_v61, %v2387_v51  ;;  %v2700_v34 = vcombine.high %v2241_v61, %v2387_v51  ;;  %v3318_v53 = vpop.f32.mrb[17].mxu0 }
 0x506   :  { %v2993_v53 = vld [vmem:[#allocation16 + $0x28] sm:$0xff] }
 0x507   :  { %v2707_v54 = vrot.slane %v2699_v24, %v3973_v41  ;;  %v2714_v56 = vrot.slane %v2700_v34, %v3973_v41  ;;  %v2992_v34 = vld [vmem:[#allocation16 + $0x20] sm:$0xff] }
 0x509   :  { %v2715_v57 = vcombine.low %v2691_v44, %v2707_v54  ;;  %v2716_v58 = vcombine.high %v2691_v44, %v2707_v54  ;;  %v2731_v59 = vcombine.low %v2698_v28, %v2714_v56  ;;  %v2732_v40 = vcombine.high %v2698_v28, %v2714_v56 }
 0x50b   :  { %v2723_v52 = vrot.slane %v2715_v57, %v3977_v47  ;;  %v2730_v60 = vrot.slane %v2716_v58, %v3977_v47  ;;  %v2739_v62 = vrot.slane %v2731_v59, %v3977_v47  ;;  %v2746_v63 = vrot.slane %v2732_v40, %v3977_v47 }
 0x50c   :  { %v3390_v57 = vpack.c.bf16 %v2993_v53, %v2992_v34 }
 0x50d   :  { %v2819_v13 = vcombine.low %v2723_v52, %v2730_v60  ;;  %v3149_v14 = vcombine.high %v2723_v52, %v2730_v60  ;;  %v2835_v33 = vcombine.low %v2739_v62, %v2746_v63  ;;  %v3150_v2 = vcombine.high %v2739_v62, %v2746_v63  ;;  %v2994_v60 = vld [vmem:[#allocation16 + $0x30] sm:$0xff]  ;;  %v2995_v62 = vld [vmem:[#allocation16 + $0x38] sm:$0xff] }
 0x50e   :  { %3391 = vmatprep.subr.bf16.mxu1 %v3390_v57 }
 0x50f   :  { %v2826_v38 = vrot.slane %v2819_v13, %v3973_v41  ;;  %v2834_v3 = vrot.slane %v3149_v14, %v3973_v41  ;;  %v2842_v4 = vrot.slane %v2835_v33, %v3973_v41  ;;  %v2850_v5 = vrot.slane %v3150_v2, %v3973_v41  ;;  %3393 = vmatpush3.bf16.msra.mxu1 %v3390_v57 }
 0x510   :  { %v3394_v2 = vpack.c.bf16 %v2995_v62, %v2994_v60 }
 0x511   :  { %v2851_v6 = vcombine.low %v2826_v38, %v2834_v3  ;;  %v2867_v7 = vcombine.low %v2842_v4, %v2850_v5  ;;  %v2852_v8 = vcombine.high %v2826_v38, %v2834_v3  ;;  %v2868_v9 = vcombine.high %v2842_v4, %v2850_v5 }
 0x512   :  { %3395 = vmatprep.subr.bf16.mxu1 %v3394_v2 }
 0x513   :  { %v4271_v10 = vrot.slane %v2851_v6, %v3977_v47  ;;  %v4274_v11 = vrot.slane %v2867_v7, %v3977_v47  ;;  %v2866_v12 = vrot.slane %v2852_v8, %v3977_v47  ;;  %v2882_v17 = vrot.slane %v2868_v9, %v3977_v47  ;;  %3397 = vmatpush3.bf16.msra.mxu1 %v3394_v2 }
 0x515   :  { %v2884_v19 = vcombine.high %v4271_v10, %v4274_v11  ;;  %v2883_v15 = vcombine.low %v4271_v10, %v4274_v11  ;;  %v2885_v20 = vcombine.low %v2866_v12, %v2882_v17  ;;  %v2886_v21 = vcombine.high %v2866_v12, %v2882_v17 }
 0x517   :  { %2957 = vrot.lane.b32.xlu0 %v2884_v19, %s3701_s0 }
 0x51b   :  { %2965 = vrot.lane.b32.xlu0 %v2885_v20, %s3713_s20  ;;  %v3109_v20 = vmul.f32 -1.442695, %v4129_v16 }
 0x51d   :  { %3453 = vpow2.f32 %v3109_v20 }
 0x51f   :  { %2973 = vrot.lane.b32.xlu0 %v2886_v21, %s3714_s29 }
 0x527   :  { %v3454_v21 = vpop.eup %3453 }
 0x528   :  { %v493_v22 = vadd.f32 1.0, %v3454_v21 }
 0x52a   :  { %3455 = vrcp.f32 %v493_v22 }
 0x534   :  { %v3456_v30 = vpop.eup %3455 }
 0x545   :  { %v2460_v32 = vpop.f32.mrb[14].mxu1  ;;  %v2533_v37 = vpop.f32.mrb[18].mxu0 }
 0x546   :  { %v3323_v39 = vpop.f32.mrb[15].mxu1  ;;  %v3328_v23 = vpop.f32.mrb[19].mxu0 }
 0x549   :  { %v2606_v43 = vpop.f32.mrb[16].mxu1  ;;  %v2679_v45 = vpop.f32.mrb[20].mxu0 }
 0x54a   :  { %v2751_v46 = vcombine.low %v2460_v32, %v2606_v43  ;;  %v2752_v1 = vcombine.high %v2460_v32, %v2606_v43  ;;  %v2767_v42 = vcombine.low %v2533_v37, %v2679_v45  ;;  %v2768_v48 = vcombine.high %v2533_v37, %v2679_v45  ;;  %v3333_v55 = vpop.f32.mrb[17].mxu1  ;;  %v3338_v61 = vpop.f32.mrb[21].mxu0 }
 0x54b   :  { %v3110_v37 = vmul.f32 -1.442695, %v4127_v18 }
 0x54c   :  { %v2759_v49 = vrot.slane %v2751_v46, %v3973_v41  ;;  %v2766_v50 = vrot.slane %v2752_v1, %v3973_v41  ;;  %v2775_v31 = vrot.slane %v2767_v42, %v3973_v41  ;;  %v2782_v0 = vrot.slane %v2768_v48, %v3973_v41 }
 0x54d   :  { %3457 = vpow2.f32 %v3110_v37 }
 0x54e   :  { %v2783_v35 = vcombine.low %v2759_v49, %v2775_v31  ;;  %v2784_v36 = vcombine.high %v2759_v49, %v2775_v31  ;;  %v2799_v51 = vcombine.low %v2766_v50, %v2782_v0  ;;  %v2800_v24 = vcombine.high %v2766_v50, %v2782_v0 }
 0x550   :  { %v2791_v44 = vrot.slane %v2783_v35, %v3977_v47  ;;  %v2798_v28 = vrot.slane %v2784_v36, %v3977_v47  ;;  %v2807_v54 = vrot.slane %v2799_v51, %v3977_v47  ;;  %v2814_v56 = vrot.slane %v2800_v24, %v3977_v47 }
 0x552   :  { %v2887_v58 = vcombine.low %v2791_v44, %v2798_v28  ;;  %v3151_v59 = vcombine.high %v2791_v44, %v2798_v28  ;;  %v2903_v40 = vcombine.low %v2807_v54, %v2814_v56  ;;  %v3152_v52 = vcombine.high %v2807_v54, %v2814_v56 }
 0x554   :  { %v2894_v63 = vrot.slane %v2887_v58, %v3973_v41  ;;  %v2902_v13 = vrot.slane %v3151_v59, %v3973_v41  ;;  %v2910_v14 = vrot.slane %v2903_v40, %v3973_v41  ;;  %v2918_v33 = vrot.slane %v3152_v52, %v3973_v41 }
 0x556   :  { %v2919_v38 = vcombine.low %v2894_v63, %v2902_v13  ;;  %v2935_v3 = vcombine.low %v2910_v14, %v2918_v33  ;;  %v2920_v4 = vcombine.high %v2894_v63, %v2902_v13  ;;  %v2936_v5 = vcombine.high %v2910_v14, %v2918_v33 }
 0x557   :  { %v3458_v39 = vpop.eup %3457 }
 0x558   :  { %v2927_v6 = vrot.slane %v2919_v38, %v3977_v47  ;;  %v2943_v7 = vrot.slane %v2935_v3, %v3977_v47  ;;  %v2934_v8 = vrot.slane %v2920_v4, %v3977_v47  ;;  %v2950_v9 = vrot.slane %v2936_v5, %v3977_v47 }
 0x559   :  { %v494_v23 = vadd.f32 1.0, %v3458_v39 }
 0x55a   :  { %v2952_v12 = vcombine.high %v2927_v6, %v2943_v7  ;;  %v2951_v17 = vcombine.low %v2927_v6, %v2943_v7  ;;  %v2953_v19 = vcombine.low %v2934_v8, %v2950_v9  ;;  %v2954_v41 = vcombine.high %v2934_v8, %v2950_v9 }
 0x55b   :  { %3459 = vrcp.f32 %v494_v23 }
 0x55c   :  { %2959 = vrot.lane.b32.xlu1 %v2952_v12, %s3701_s0  ;;  %s3715_s0 = smov [#allocation17]  }
 0x55d   :  { %s3085_s30 = sshll.u32 %s3715_s0, 4  ;;  %s3086_s30 = int_to_ptr.vmem [resolvable:$true] %s3085_s30 }
 0x55e   :  { %s3659_s11 = scalar_lea.vmem %s3086_s30, 256  ;;  %p3664_p3 = scmp.lt.s32.totalorder %s3086_s30, %s3086_s30 }
 0x55f   :  { %p3660_p2 = scmp.ne.s32.totalorder %s3086_s30, %s3659_s11  ;;  %p3665_p4 = scmp.lt.s32.totalorder %s3659_s11, %s3659_s11 }
 0x560   :  { %2967 = vrot.lane.b32.xlu1 %v2953_v19, %s3713_s20 }
 0x561   :  { %p3666_p5 = por %p3665_p4, %p3664_p3 }
 0x563   :  { %p3667_p6 = pnand %p3666_p5, %p3660_p2 }
 0x564   :  { %2975 = vrot.lane.b32.xlu1 %v2954_v41, %s3714_s29 }
 0x565   :  { %v3460_v46 = vpop.eup %3459 }
 0x589   :  { %v2958_v25 = vpop.permute.xlu0 %2957 }
 0x58a   :  { %v2979_v47 = vsel %vm1401_vm3, %v2883_v15, %v2958_v25 }
 0x58d   :  { %v2966_v26 = vpop.permute.xlu0 %2965 }
 0x58e   :  { %v2981_v27 = vsel %vm163_vm0, %v2979_v47, %v2966_v26 }
 0x591   :  { %v2974_v29 = vpop.permute.xlu0 %2973 }
 0x592   :  { %v2984_v32 = vsel %vm2983_vm5, %v2981_v27, %v2974_v29 }
 0x593   :  { %v2986_v16 = vmul.f32 %v3456_v30, %v2984_v32 }
 0x595   :  { %3355 = vmatprep.mubr.msk.f32.mxu1 %vm2996_vm6, %v2986_v16 }
 0x5ce   :  { %v2960_v43 = vpop.permute.xlu1 %2959 }
 0x5cf   :  { %v2980_v11 = vsel %vm1401_vm3, %v2951_v17, %v2960_v43 }
 0x5d2   :  { %v2968_v10 = vpop.permute.xlu1 %2967 }
 0x5d3   :  { %v2982_v15 = vsel %vm163_vm0, %v2980_v11, %v2968_v10 }
 0x5d6   :  { %v2976_v45 = vpop.permute.xlu1 %2975 }
 0x5d7   :  { %v2985_v1 = vsel %vm2983_vm5, %v2982_v15, %v2976_v45 }
 0x5d8   :  { %v2987_v42 = vmul.f32 %v3460_v46, %v2985_v1 }
 0x5da   :  { %3356 = vmatmul.mubr.msk.f32.vlgmr.msra.gmra.mrb[18].mxu1 %vm2996_vm6, %v2987_v42 }
 0x6ad   :  { %v3357_v18 = vpop.f32.mrb[18].mxu1 }
 0x6ae   :  { %3079 = vst.msk [vmem:[#allocation17 + $0x8] sm:$0xff] %vm163_vm0, %v3357_v18  ;;  %v3069_v48 = vpop.f32.mrb[19].mxu1 }
 0x6af   :  { %3078 = vst.msk [vmem:[#allocation17] sm:$0xff] %vm163_vm0, %v3069_v48 }
 0x6b0   :  { %3670 = shalt.err (!%p3667_p6)
}
 0x6b1   :  { %s3671_s10 = scalar_lea.hbm %s4343_s9, 256 }
 0x6b2   :  { %p3672_p7 = scmp.ne.s32.totalorder %s4343_s9, %s3671_s10  ;;  %p3675_p8 = scmp.lt.u32.totalorder %s3671_s10, %s4343_s9 }
 0x6b4   :  { %p3677_p9 = pnand %p3675_p8, %p3672_p7 }
 0x6b6   :  { %3680 = shalt.err (!%p3677_p9)
}
 0x6b7   :  { %3091 = dma.vmem_to_hbm [thread:$0]  %s3086_s30, 256, %s4343_s9, [#allocation4], %s3695_s21, %s3695_s21, %s3696_s22  }
 0x6b8   :  { %3691 = dma.done.wait [#allocation4], 256  }
 0x6b9   :  { %3692 = vsyncadd [#allocation4], 4294967040 }
 0x6ba   :  { %3095 = vsyncpa [#allocation3], 1 }
 0x6bb   :  { %3096 = vsyncpa [#allocation6], 1 }
 0x6bc   :  { %3097 = vsyncpa [#allocation9], 1 }
 0x6bd   :  { %3098 = vsyncpa [#allocation12], 1 }
 0x6be   :  { %3099 = vsyncpa [#allocation15], 1 }
 0x6bf   :  { %3100 = vsyncpa [#allocation4], 1 }

</bundles_post_ra>
